<compile_context>
chip_gen: v6e
topology: v6e:2x2x1
jax: 0.10.0
libtpu: 0.0.40
codegen_flags: <defaults>
</compile_context>

<pallas_src>
import functools

import jax
import jax.numpy as jnp
import numpy as np
from jax import lax
from jax.experimental import pallas as pl
from jax.experimental.pallas import tpu as pltpu

BN_EPS = 1e-5
_MATMUL_DTYPE = jnp.bfloat16     # MXU input dtype (accumulation is always f32)
_ACT_DTYPE = jnp.bfloat16        # HBM dtype for intermediate activations (y1, h, V, y2)
_VMEM_BUDGET = 24 << 20          # target per-call working set (fits v7x's 64 MiB VMEM)
_VMEM_LIMIT = 48 << 20           # scoped VMEM limit handed to Mosaic


def _compiler_params(n_axes=1):
    return pltpu.CompilerParams(
        dimension_semantics=("parallel",) * n_axes,
        vmem_limit_bytes=_VMEM_LIMIT)


def _row_tile(m, row_bytes, budget=_VMEM_BUDGET, min_steps=2):
    """Largest row tile dividing m under the VMEM budget, preferring a grid with at
    least `min_steps` steps so both v7x TensorCores get work."""
    cands = [t for t in (4096, 2048, 1024, 512, 256, 128, 64, 32, 16, 8) if m % t == 0]
    for t in cands:
        if t * row_bytes <= budget and m // t >= min_steps:
            return t
    for t in cands:
        if t * row_bytes <= budget:
            return t
    return cands[-1] if cands else m


# ------------------------------- Pallas kernels ------------------------------- #

def _matmul_stats_kernel(*refs, pre_affine):
    """Conv-as-matmul: y = (relu(a*scale+shift) if pre_affine else a) @ W + b, plus
    per-tile BN partial stats (sum / sum-of-squares of the f32 y)."""
    if pre_affine:
        a_ref, w_ref, b_ref, sc_ref, sh_ref, y_ref, sum_ref, sq_ref = refs
    else:
        a_ref, w_ref, b_ref, y_ref, sum_ref, sq_ref = refs

    a = a_ref[...]
    if pre_affine:
        # Affine + ReLU of the previous layer's BN, kept in f32 (VPU), then one bf16 cast.
        a = jnp.maximum(a.astype(jnp.float32) * sc_ref[...] + sh_ref[...], 0.0)
    y = jnp.dot(a.astype(_MATMUL_DTYPE), w_ref[...],
                preferred_element_type=jnp.float32) + b_ref[...]
    y_ref[...] = y.astype(y_ref.dtype)
    sum_ref[0] = jnp.sum(y, axis=0, keepdims=True)
    sq_ref[0] = jnp.sum(y * y, axis=0, keepdims=True)


def _conv3x3_kernel(v_ref, w_ref, b_ref, y_ref, sum_ref, sq_ref, *,
                    row_offs, out_h, out_w):
    """3x3 conv as 3 dots with K = 3*Ci.

    v_ref: (1, rows, Wo, 3*Ci) column-unrolled, zero-padded, already-activated input
           (rows are padded image rows; for stride 2 they are parity-split).
    w_ref: (3, 3*Ci, Co) weights grouped by kernel-row offset.
    For kernel-row tap t, the rows feeding all output rows are the contiguous slice
    v_ref[0, row_offs[t] : row_offs[t] + out_h]."""
    c3 = v_ref.shape[-1]
    co = w_ref.shape[-1]
    acc = jnp.zeros((out_h * out_w, co), jnp.float32)
    for t, r0 in enumerate(row_offs):
        a = v_ref[0, r0:r0 + out_h]                       # (out_h, Wo, 3*Ci), contiguous
        acc = acc + jnp.dot(a.reshape(out_h * out_w, c3), w_ref[t],
                            preferred_element_type=jnp.float32)
    y = acc + b_ref[...]
    y_ref[...] = y.astype(y_ref.dtype)
    sum_ref[0] = jnp.sum(y, axis=0, keepdims=True)
    sq_ref[0] = jnp.sum(y * y, axis=0, keepdims=True)


def _affine_relu_kernel(x_ref, a_ref, b_ref, o_ref):
    """o = relu(x * a + b), affine math in f32."""
    o_ref[...] = jnp.maximum(
        x_ref[...].astype(jnp.float32) * a_ref[...] + b_ref[...], 0.0
    ).astype(o_ref.dtype)


def _bn_add_relu_kernel(y_ref, sc_ref, a1_ref, b1_ref, a2_ref, b2_ref, o_ref):
    """Fused epilogue: relu( relu(bn3(y)) + bn_shortcut(sc) )."""
    h = jnp.maximum(y_ref[...].astype(jnp.float32) * a1_ref[...] + b1_ref[...], 0.0)
    s = sc_ref[...].astype(jnp.float32) * a2_ref[...] + b2_ref[...]
    o_ref[...] = jnp.maximum(h + s, 0.0).astype(o_ref.dtype)


# ------------------------------ Pallas wrappers ------------------------------ #

def matmul_stats(a, w, b, scale_in=None, shift_in=None, out_dtype=jnp.float32):
    """a:(M,K), w:(K,C), b:(C,).  Optionally applies relu(a*scale_in+shift_in) (the
    previous layer's BN + ReLU) inside the kernel before the matmul.  Returns y (M,C)
    in `out_dtype` and the per-channel f32 sum / sum-of-squares of y."""
    M, K = a.shape
    C = w.shape[1]
    pre = scale_in is not None

    a_bytes = a.dtype.itemsize
    o_bytes = np.dtype(out_dtype).itemsize
    # Double-buffered input + output tiles per row, plus the f32 stat rows.
    row_bytes = 2 * (K * a_bytes + C * o_bytes) + 2 * C * 4
    resident = K * C * 2 + 6 * max(K, C) * 4          # weights + bias/scale/shift rows
    tm = _row_tile(M, row_bytes, budget=max(_VMEM_BUDGET - resident, 1 << 20))
    grid = (M // tm,)

    in_specs = [
        pl.BlockSpec((tm, K), lambda i: (i, 0)),
        pl.BlockSpec((K, C), lambda i: (0, 0)),
        pl.BlockSpec((1, C), lambda i: (0, 0)),
    ]
    args = [a, w.astype(_MATMUL_DTYPE), b.reshape(1, C).astype(jnp.float32)]
    if pre:
        in_specs += [pl.BlockSpec((1, K), lambda i: (0, 0)),
                     pl.BlockSpec((1, K), lambda i: (0, 0))]
        args += [scale_in.reshape(1, K), shift_in.reshape(1, K)]

    kern = functools.partial(_matmul_stats_kernel, pre_affine=pre)
    y, s_p, q_p = pl.pallas_call(
        kern,
        out_shape=(
            jax.ShapeDtypeStruct((M, C), out_dtype),
            jax.ShapeDtypeStruct((grid[0], 1, C), jnp.float32),
            jax.ShapeDtypeStruct((grid[0], 1, C), jnp.float32),
        ),
        grid_spec=pltpu.PrefetchScalarGridSpec(
            num_scalar_prefetch=0,
            grid=grid,
            in_specs=in_specs,
            out_specs=[
                pl.BlockSpec((tm, C), lambda i: (i, 0)),
                pl.BlockSpec((1, 1, C), lambda i: (i, 0, 0)),
                pl.BlockSpec((1, 1, C), lambda i: (i, 0, 0)),
            ],
        ),
        compiler_params=_compiler_params(1),
    )(*args)
    return y, s_p[:, 0, :].sum(0), q_p[:, 0, :].sum(0)


def conv3x3_stats(h_img, w2_flat, b2, stride):
    """3x3 conv (padding=1, stride 1 or 2) over the already-activated input h_img
    (N,H,W,Ci), as 3 in-kernel dots with K=3*Ci.  The pad / column-unroll / parity-split
    layout glue is done once in XLA (bf16).  Returns y2 (N*Ho*Wo, Co) + BN partials."""
    N, H, W, Ci = h_img.shape
    Co = w2_flat.shape[1]
    Ho, Wo = H // stride, W // stride
    C3 = 3 * Ci
    w3 = w2_flat.reshape(3, C3, Co).astype(_MATMUL_DTYPE)   # grouped by kernel-row dh

    hp = jnp.pad(h_img, ((0, 0), (1, 1), (1, 1), (0, 0)))   # zero ring (input already
                                                            # activated, so pads stay 0)
    # Column unroll: V[n, r, j, t*Ci + c] = hp[n, r, stride*j + t, c]
    cols = [hp[:, :, t:t + stride * Wo:stride, :] for t in range(3)]
    v = jnp.concatenate(cols, axis=-1)                      # (N, H+2, Wo, 3*Ci)
    if stride == 1:
        rows = H + 2
        row_offs = (0, 1, 2)                                # padded row = i + dh
    else:
        rp = (H + 2) // 2
        # Parity-split the padded row axis so each kernel-row tap is a contiguous slice:
        # padded row 2k+par -> plane `par`, row k; folded row index = par*rp + k.
        v = v.reshape(N, rp, 2, Wo, C3).transpose(0, 2, 1, 3, 4).reshape(N, 2 * rp, Wo, C3)
        rows = 2 * rp
        row_offs = (0, rp, 1)                               # dh=0 -> even[i]; dh=1 -> odd[i]; dh=2 -> even[i+1]
    v = v.astype(_MATMUL_DTYPE)

    kern = functools.partial(_conv3x3_kernel, row_offs=row_offs, out_h=Ho, out_w=Wo)
    y2, s_p, q_p = pl.pallas_call(
        kern,
        out_shape=(
            jax.ShapeDtypeStruct((N * Ho * Wo, Co), _ACT_DTYPE),
            jax.ShapeDtypeStruct((N, 1, Co), jnp.float32),
            jax.ShapeDtypeStruct((N, 1, Co), jnp.float32),
        ),
        grid_spec=pltpu.PrefetchScalarGridSpec(
            num_scalar_prefetch=0,
            grid=(N,),
            in_specs=[
                pl.BlockSpec((1, rows, Wo, C3), lambda n: (n, 0, 0, 0)),
                pl.BlockSpec((3, C3, Co), lambda n: (0, 0, 0)),
                pl.BlockSpec((1, Co), lambda n: (0, 0)),
            ],
            out_specs=[
                pl.BlockSpec((Ho * Wo, Co), lambda n: (n, 0)),
                pl.BlockSpec((1, 1, Co), lambda n: (n, 0, 0)),
                pl.BlockSpec((1, 1, Co), lambda n: (n, 0, 0)),
            ],
        ),
        compiler_params=_compiler_params(1),
    )(v, w3, b2.reshape(1, Co).astype(jnp.float32))
    return y2, s_p[:, 0, :].sum(0), q_p[:, 0, :].sum(0)


def _channelwise_call(kernel, arrays, chan_params, out_dtype):
    """Run an elementwise kernel over (M, C) activations with per-channel parameters,
    presenting a lane-dense (last dim = 128) view when the shapes allow it."""
    M, C = arrays[0].shape
    if C < 128 and 128 % C == 0 and (M * C) % 128 == 0:
        rep = 128 // C
        mr = (M * C) // 128
        arrays = [a.reshape(mr, 128) for a in arrays]
        chan_params = [jnp.tile(p.reshape(1, C), (1, rep)) for p in chan_params]
        out_reshape = (M, C)
        m2, L = mr, 128
    else:
        chan_params = [p.reshape(1, C) for p in chan_params]
        out_reshape = None
        m2, L = M, C

    row_bytes = sum(2 * L * a.dtype.itemsize for a in arrays) \
        + 2 * L * np.dtype(out_dtype).itemsize
    tm = _row_tile(m2, row_bytes)
    grid = (m2 // tm,)

    in_specs = [pl.BlockSpec((tm, L), lambda i: (i, 0)) for _ in arrays] + \
               [pl.BlockSpec((1, L), lambda i: (0, 0)) for _ in chan_params]
    out = pl.pallas_call(
        kernel,
        out_shape=jax.ShapeDtypeStruct((m2, L), out_dtype),
        grid_spec=pltpu.PrefetchScalarGridSpec(
            num_scalar_prefetch=0,
            grid=grid,
            in_specs=in_specs,
            out_specs=pl.BlockSpec((tm, L), lambda i: (i, 0)),
        ),
        compiler_params=_compiler_params(1),
    )(*arrays, *chan_params)
    return out.reshape(out_reshape) if out_reshape is not None else out


# --------------------------------- Glue / block -------------------------------- #

def _bn_scale_shift(s, sq, m_rows, gamma, beta):
    """Training-mode BN folded into a per-channel affine: y*scale + shift."""
    mean = s / m_rows
    var = jnp.maximum(sq / m_rows - mean * mean, 0.0)   # clamp E[x^2]-E[x]^2 cancellation
    inv = lax.rsqrt(var + BN_EPS)
    scale = gamma * inv
    shift = beta - mean * scale
    return scale, shift


def res_bottleneck_block(x_nchw, params, downsample):
    N, Cin, H, W = x_nchw.shape
    mid = params["w1"].shape[1]
    Cout = params["w3"].shape[1]
    stride = 2 if downsample else 1
    Ho, Wo = H // stride, W // stride
    has_proj = downsample or (Cin != Cout)

    x = jnp.transpose(x_nchw, (0, 2, 3, 1)).astype(jnp.float32)       # NHWC
    x_flat = x.reshape(N * H * W, Cin)
    x_mm = x_flat.astype(_MATMUL_DTYPE)        # MXU-input precast: halves HBM reads

    # --- conv1 (1x1)  [+ fused projection shortcut when its stride is 1] ---
    if has_proj and stride == 1:
        w_cat = jnp.concatenate([params["w1"], params["ws"]], axis=1)
        b_cat = jnp.concatenate([params["b1"], params["bs"]], axis=0)
        y_cat, s_cat, q_cat = matmul_stats(x_mm, w_cat, b_cat, out_dtype=_ACT_DTYPE)
        y1, sc_flat = y_cat[:, :mid], y_cat[:, mid:]
        s1, s_sc = s_cat[:mid], s_cat[mid:]
        q1, q_sc = q_cat[:mid], q_cat[mid:]
        sc_scale, sc_shift = _bn_scale_shift(s_sc, q_sc, N * Ho * Wo,
                                             params["gs"], params["bes"])
    else:
        y1, s1, q1 = matmul_stats(x_mm, params["w1"], params["b1"], out_dtype=_ACT_DTYPE)
        if has_proj:   # strided projection shortcut (downsample)
            xs = x[:, ::stride, ::stride, :].reshape(N * Ho * Wo, Cin)
            sc_flat, s_sc, q_sc = matmul_stats(xs.astype(_MATMUL_DTYPE),
                                               params["ws"], params["bs"],
                                               out_dtype=jnp.float32)
            sc_scale, sc_shift = _bn_scale_shift(s_sc, q_sc, N * Ho * Wo,
                                                 params["gs"], params["bes"])
        else:          # identity shortcut
            sc_flat = x_flat
            sc_scale = jnp.ones((Cout,), jnp.float32)
            sc_shift = jnp.zeros((Cout,), jnp.float32)

    scale1, shift1 = _bn_scale_shift(s1, q1, N * H * W, params["g1"], params["be1"])

    # --- bn1 + ReLU (elementwise Pallas kernel, bf16 output feeding the 3x3 conv) ---
    h = _channelwise_call(_affine_relu_kernel, [y1], [scale1, shift1], _ACT_DTYPE)

    # --- conv2 (3x3, stride): 3 MXU dots with K = 3*Ci over a column-unrolled input ---
    y2, s2, q2 = conv3x3_stats(h.reshape(N, H, W, mid), params["w2"], params["b2"], stride)
    scale2, shift2 = _bn_scale_shift(s2, q2, N * Ho * Wo, params["g2"], params["be2"])

    # --- conv3 (1x1) with bn2 + ReLU fused on its input ---
    y3, s3, q3 = matmul_stats(y2, params["w3"], params["b3"],
                              scale_in=scale2, shift_in=shift2, out_dtype=jnp.float32)
    scale3, shift3 = _bn_scale_shift(s3, q3, N * Ho * Wo, params["g3"], params["be3"])

    # --- fused epilogue: relu( relu(bn3(y3)) + bn_shortcut(sc) ), lane-dense ---
    out_flat = _channelwise_call(_bn_add_relu_kernel, [y3, sc_flat],
                                 [scale3, shift3, sc_scale, sc_shift], jnp.float32)
    out = out_flat.reshape(N, Ho, Wo, Cout)
    return jnp.transpose(out, (0, 3, 1, 2))                           # back to NCHW


# ------------------------------ Pure-JAX reference ----------------------------- #

def reference(x_nchw, params, downsample):
    stride = 2 if downsample else 1

    def conv1x1(x, w, b, s=1):
        wk = jnp.transpose(w, (1, 0))[:, :, None, None]               # OIHW
        y = lax.conv_general_dilated(x, wk, (s, s), "VALID",
                                     dimension_numbers=("NCHW", "OIHW", "NCHW"))
        return y + b[None, :, None, None]

    def conv3x3(x, w, b, s):
        cin, cout = x.shape[1], w.shape[1]
        wk = w.reshape(3, 3, cin, cout).transpose(3, 2, 0, 1)         # OIHW
        y = lax.conv_general_dilated(x, wk, (s, s), ((1, 1), (1, 1)),
                                     dimension_numbers=("NCHW", "OIHW", "NCHW"))
        return y + b[None, :, None, None]

    def bn(x, g, be):
        mean = jnp.mean(x, axis=(0, 2, 3), keepdims=True)
        var = jnp.mean((x - mean) ** 2, axis=(0, 2, 3), keepdims=True)
        return (x - mean) / jnp.sqrt(var + BN_EPS) * g[None, :, None, None] \
            + be[None, :, None, None]

    relu = lambda v: jnp.maximum(v, 0.0)
    x = x_nchw.astype(jnp.float32)
    cin, cout = params["w1"].shape[0], params["w3"].shape[1]
    if downsample or cin != cout:
        sc = bn(conv1x1(x, params["ws"], params["bs"], stride), params["gs"], params["bes"])
    else:
        sc = x
    h = relu(bn(conv1x1(x, params["w1"], params["b1"]), params["g1"], params["be1"]))
    h = relu(bn(conv3x3(h, params["w2"], params["b2"], stride), params["g2"], params["be2"]))
    h = relu(bn(conv1x1(h, params["w3"], params["b3"]), params["g3"], params["be3"]))
    return relu(h + sc)


# ------------------------------------ Main ------------------------------------- #

if __name__ == "__main__":
    key = jax.random.PRNGKey(0)

    def make_params(k, cin, cout):
        mid = cout // 4
        ks = jax.random.split(k, 16)
        return {
            # Conv weights stored directly in matmul form: 1x1 -> (Cin, Cout);
            # 3x3 -> (kh*kw*Cin, Cout) with (kh, kw, cin) row order.
            "w1": 0.1 * jax.random.normal(ks[0], (cin, mid), jnp.float32),
            "b1": 0.1 * jax.random.normal(ks[1], (mid,), jnp.float32),
            "w2": 0.1 * jax.random.normal(ks[2], (9 * mid, mid), jnp.float32),
            "b2": 0.1 * jax.random.normal(ks[3], (mid,), jnp.float32),
            "w3": 0.1 * jax.random.normal(ks[4], (mid, cout), jnp.float32),
            "b3": 0.1 * jax.random.normal(ks[5], (cout,), jnp.float32),
            "ws": 0.1 * jax.random.normal(ks[6], (cin, cout), jnp.float32),
            "bs": 0.1 * jax.random.normal(ks[7], (cout,), jnp.float32),
            "g1": 1.0 + 0.1 * jax.random.normal(ks[8], (mid,), jnp.float32),
            "be1": 0.1 * jax.random.normal(ks[9], (mid,), jnp.float32),
            "g2": 1.0 + 0.1 * jax.random.normal(ks[10], (mid,), jnp.float32),
            "be2": 0.1 * jax.random.normal(ks[11], (mid,), jnp.float32),
            "g3": 1.0 + 0.1 * jax.random.normal(ks[12], (cout,), jnp.float32),
            "be3": 0.1 * jax.random.normal(ks[13], (cout,), jnp.float32),
            "gs": 1.0 + 0.1 * jax.random.normal(ks[14], (cout,), jnp.float32),
            "bes": 0.1 * jax.random.normal(ks[15], (cout,), jnp.float32),
        }

    configs = [
        # (N, Cin, Cout, H, W, downsample)
        (2, 16, 64, 16, 16, True),    # stride-2 3x3 + strided projection shortcut
        (2, 16, 64, 16, 16, False),   # stride-1 3x3 + projection shortcut fused in conv1
        (2, 128, 128, 8, 8, False),   # identity shortcut
    ]
    # bf16 MXU inputs + bf16 activations vs. the f32 reference: BatchNorm's inv-std
    # amplifies rounding noise, so allow ~4e-2 absolute/relative.
    tol = 4e-2 if _MATMUL_DTYPE == jnp.bfloat16 else 2e-3

    for idx, (N, Cin, Cout, H, W, ds) in enumerate(configs):
        kx, kp, key = jax.random.split(key, 3)
        x = jax.random.normal(kx, (N, Cin, H, W), jnp.float32)
        params = make_params(kp, Cin, Cout)

        fwd = jax.jit(functools.partial(res_bottleneck_block, downsample=ds))
        out = jax.block_until_ready(fwd(x, params))
        ref = reference(x, params, ds)

        so = 2 if ds else 1
        assert out.shape == ref.shape == (N, Cout, H // so, W // so)
        if not jnp.allclose(out, ref, atol=tol, rtol=tol):
            err = float(jnp.max(jnp.abs(out - ref)))
            raise AssertionError(f"config {idx}: Pallas mismatch vs reference "
                                 f"(max err {err:e})")

    print("KERNEL_OK")
</pallas_src>

<mosaic_0001>
module attributes {stable_mosaic.version = 11 : i64} {
  func.func @_matmul_stats_kernel(%arg0: i32, %arg1: memref<256x16xbf16, #tpu.memory_space<vmem>>, %arg2: memref<16x16xbf16, #tpu.memory_space<vmem>>, %arg3: memref<1x16xf32, #tpu.memory_space<vmem>>, %arg4: memref<256x16xbf16, #tpu.memory_space<vmem>>, %arg5: memref<1x1x16xf32, #tpu.memory_space<vmem>>, %arg6: memref<1x1x16xf32, #tpu.memory_space<vmem>>) attributes {dimension_semantics = [#tpu.dimension_semantics<parallel>], iteration_bounds = array<i64: 2>, scalar_prefetch = 0 : i64, scratch_operands = 0 : i64, tpu.core_type = #tpu.core_type<tc>, window_params = [{transform_indices = @transform_0, window_bounds = array<i64: 256, 16>}, {pipeline_mode = #tpu.pipeline_mode<synchronous>, transform_indices = @transform_1, window_bounds = array<i64: 16, 16>}, {pipeline_mode = #tpu.pipeline_mode<synchronous>, transform_indices = @transform_2, window_bounds = array<i64: 1, 16>}, {transform_indices = @transform_3, window_bounds = array<i64: 256, 16>}, {transform_indices = @transform_4, window_bounds = array<i64: 1, 1, 16>}, {transform_indices = @transform_5, window_bounds = array<i64: 1, 1, 16>}]} {
    %c0 = arith.constant 0 : index
    %c0_0 = arith.constant 0 : index
    %0 = vector.load %arg1[%c0, %c0_0] : memref<256x16xbf16, #tpu.memory_space<vmem>>, vector<256x16xbf16>
    %c0_1 = arith.constant 0 : index
    %c0_2 = arith.constant 0 : index
    %1 = vector.load %arg2[%c0_1, %c0_2] : memref<16x16xbf16, #tpu.memory_space<vmem>>, vector<16x16xbf16>
    %cst = arith.constant dense<0.000000e+00> : vector<256x16xf32>
    %2 = tpu.matmul %0, %1, %cst {dimension_numbers = #tpu.dot_dimension_numbers<[1], [0], [0], [1], [0, 0, 1, 1], [], []>} : vector<256x16xbf16>, vector<16x16xbf16>, vector<256x16xf32> -> vector<256x16xf32>
    %c0_3 = arith.constant 0 : index
    %c0_4 = arith.constant 0 : index
    %3 = vector.load %arg3[%c0_3, %c0_4] : memref<1x16xf32, #tpu.memory_space<vmem>>, vector<1x16xf32>
    %4 = vector.broadcast %3 : vector<1x16xf32> to vector<256x16xf32>
    %5 = arith.addf %2, %4 : vector<256x16xf32>
    %6 = arith.truncf %5 : vector<256x16xf32> to vector<256x16xbf16>
    %c0_5 = arith.constant 0 : index
    %c0_6 = arith.constant 0 : index
    %7 = vector.load %arg4[%c0_5, %c0_6] : memref<256x16xbf16, #tpu.memory_space<vmem>>, vector<256x16xbf16>
    tpu.vector_store %arg4[%c0_5, %c0_6], %6 {strides = array<i32>} : memref<256x16xbf16, #tpu.memory_space<vmem>>, vector<256x16xbf16>,
    %cst_7 = arith.constant dense<0.000000e+00> : vector<16xf32>
    %8 = vector.multi_reduction <add>, %5, %cst_7 [0] : vector<256x16xf32> to vector<16xf32>
    %9 = vector.shape_cast %8 : vector<16xf32> to vector<1x16xf32>
    %c0_8 = arith.constant 0 : index
    %c0_9 = arith.constant 0 : index
    %c0_10 = arith.constant 0 : index
    %10 = vector.load %arg5[%c0_8, %c0_9, %c0_10] : memref<1x1x16xf32, #tpu.memory_space<vmem>>, vector<1x1x16xf32>
    %11 = vector.shape_cast %10 : vector<1x1x16xf32> to vector<1x16xf32>
    %12 = vector.shape_cast %9 : vector<1x16xf32> to vector<1x1x16xf32>
    tpu.vector_store %arg5[%c0_8, %c0_9, %c0_10], %12 {strides = array<i32>} : memref<1x1x16xf32, #tpu.memory_space<vmem>>, vector<1x1x16xf32>,
    %13 = arith.mulf %5, %5 : vector<256x16xf32>
    %cst_11 = arith.constant dense<0.000000e+00> : vector<16xf32>
    %14 = vector.multi_reduction <add>, %13, %cst_11 [0] : vector<256x16xf32> to vector<16xf32>
    %15 = vector.shape_cast %14 : vector<16xf32> to vector<1x16xf32>
    %c0_12 = arith.constant 0 : index
    %c0_13 = arith.constant 0 : index
    %c0_14 = arith.constant 0 : index
    %16 = vector.load %arg6[%c0_12, %c0_13, %c0_14] : memref<1x1x16xf32, #tpu.memory_space<vmem>>, vector<1x1x16xf32>
    %17 = vector.shape_cast %16 : vector<1x1x16xf32> to vector<1x16xf32>
    %18 = vector.shape_cast %15 : vector<1x16xf32> to vector<1x1x16xf32>
    tpu.vector_store %arg6[%c0_12, %c0_13, %c0_14], %18 {strides = array<i32>} : memref<1x1x16xf32, #tpu.memory_space<vmem>>, vector<1x1x16xf32>,
    return
  }
  func.func @transform_0(%arg0: i32) -> (i32, i32) {
    %c0_i32 = arith.constant 0 : i32
    %c0_i32_0 = arith.constant 0 : i32
    return %arg0, %c0_i32 : i32, i32
  }
  func.func @transform_1(%arg0: i32) -> (i32, i32) {
    %c0_i32 = arith.constant 0 : i32
    %c0_i32_0 = arith.constant 0 : i32
    %c0_i32_1 = arith.constant 0 : i32
    return %c0_i32, %c0_i32_0 : i32, i32
  }
  func.func @transform_2(%arg0: i32) -> (i32, i32) {
    %c0_i32 = arith.constant 0 : i32
    %c0_i32_0 = arith.constant 0 : i32
    %c0_i32_1 = arith.constant 0 : i32
    return %c0_i32, %c0_i32_0 : i32, i32
  }
  func.func @transform_3(%arg0: i32) -> (i32, i32) {
    %c0_i32 = arith.constant 0 : i32
    %c0_i32_0 = arith.constant 0 : i32
    return %arg0, %c0_i32 : i32, i32
  }
  func.func @transform_4(%arg0: i32) -> (i32, i32, i32) {
    %c0_i32 = arith.constant 0 : i32
    %c0_i32_0 = arith.constant 0 : i32
    %c0_i32_1 = arith.constant 0 : i32
    return %arg0, %c0_i32, %c0_i32_0 : i32, i32, i32
  }
  func.func @transform_5(%arg0: i32) -> (i32, i32, i32) {
    %c0_i32 = arith.constant 0 : i32
    %c0_i32_0 = arith.constant 0 : i32
    %c0_i32_1 = arith.constant 0 : i32
    return %arg0, %c0_i32, %c0_i32_0 : i32, i32, i32
  }
}

module attributes {stable_mosaic.version = 11 : i64} {
  func.func @_affine_relu_kernel(%arg0: i32, %arg1: memref<32x128xbf16, #tpu.memory_space<vmem>>, %arg2: memref<1x128xf32, #tpu.memory_space<vmem>>, %arg3: memref<1x128xf32, #tpu.memory_space<vmem>>, %arg4: memref<32x128xbf16, #tpu.memory_space<vmem>>) attributes {dimension_semantics = [#tpu.dimension_semantics<parallel>], iteration_bounds = array<i64: 2>, scalar_prefetch = 0 : i64, scratch_operands = 0 : i64, tpu.core_type = #tpu.core_type<tc>, window_params = [{transform_indices = @transform_0, window_bounds = array<i64: 32, 128>}, {pipeline_mode = #tpu.pipeline_mode<synchronous>, transform_indices = @transform_1, window_bounds = array<i64: 1, 128>}, {pipeline_mode = #tpu.pipeline_mode<synchronous>, transform_indices = @transform_2, window_bounds = array<i64: 1, 128>}, {transform_indices = @transform_3, window_bounds = array<i64: 32, 128>}]} {
    %c0 = arith.constant 0 : index
    %c0_0 = arith.constant 0 : index
    %0 = vector.load %arg1[%c0, %c0_0] : memref<32x128xbf16, #tpu.memory_space<vmem>>, vector<32x128xbf16>
    %1 = arith.extf %0 : vector<32x128xbf16> to vector<32x128xf32>
    %c0_1 = arith.constant 0 : index
    %c0_2 = arith.constant 0 : index
    %2 = vector.load %arg2[%c0_1, %c0_2] : memref<1x128xf32, #tpu.memory_space<vmem>>, vector<1x128xf32>
    %3 = vector.broadcast %2 : vector<1x128xf32> to vector<32x128xf32>
    %4 = arith.mulf %1, %3 : vector<32x128xf32>
    %c0_3 = arith.constant 0 : index
    %c0_4 = arith.constant 0 : index
    %5 = vector.load %arg3[%c0_3, %c0_4] : memref<1x128xf32, #tpu.memory_space<vmem>>, vector<1x128xf32>
    %6 = vector.broadcast %5 : vector<1x128xf32> to vector<32x128xf32>
    %7 = arith.addf %4, %6 : vector<32x128xf32>
    %cst = arith.constant 0.000000e+00 : f32
    %8 = vector.broadcast %cst : f32 to vector<32x128xf32>
    %9 = arith.maximumf %7, %8 : vector<32x128xf32>
    %10 = arith.truncf %9 : vector<32x128xf32> to vector<32x128xbf16>
    %c0_5 = arith.constant 0 : index
    %c0_6 = arith.constant 0 : index
    %11 = vector.load %arg4[%c0_5, %c0_6] : memref<32x128xbf16, #tpu.memory_space<vmem>>, vector<32x128xbf16>
    tpu.vector_store %arg4[%c0_5, %c0_6], %10 {strides = array<i32>} : memref<32x128xbf16, #tpu.memory_space<vmem>>, vector<32x128xbf16>,
    return
  }
  func.func @transform_0(%arg0: i32) -> (i32, i32) {
    %c0_i32 = arith.constant 0 : i32
    %c0_i32_0 = arith.constant 0 : i32
    return %arg0, %c0_i32 : i32, i32
  }
  func.func @transform_1(%arg0: i32) -> (i32, i32) {
    %c0_i32 = arith.constant 0 : i32
    %c0_i32_0 = arith.constant 0 : i32
    %c0_i32_1 = arith.constant 0 : i32
    return %c0_i32, %c0_i32_0 : i32, i32
  }
  func.func @transform_2(%arg0: i32) -> (i32, i32) {
    %c0_i32 = arith.constant 0 : i32
    %c0_i32_0 = arith.constant 0 : i32
    %c0_i32_1 = arith.constant 0 : i32
    return %c0_i32, %c0_i32_0 : i32, i32
  }
  func.func @transform_3(%arg0: i32) -> (i32, i32) {
    %c0_i32 = arith.constant 0 : i32
    %c0_i32_0 = arith.constant 0 : i32
    return %arg0, %c0_i32 : i32, i32
  }
}

module attributes {stable_mosaic.version = 11 : i64} {
  func.func @_matmul_stats_kernel(%arg0: i32, %arg1: memref<64x16xbf16, #tpu.memory_space<vmem>>, %arg2: memref<16x64xbf16, #tpu.memory_space<vmem>>, %arg3: memref<1x64xf32, #tpu.memory_space<vmem>>, %arg4: memref<64x64xf32, #tpu.memory_space<vmem>>, %arg5: memref<1x1x64xf32, #tpu.memory_space<vmem>>, %arg6: memref<1x1x64xf32, #tpu.memory_space<vmem>>) attributes {dimension_semantics = [#tpu.dimension_semantics<parallel>], iteration_bounds = array<i64: 2>, scalar_prefetch = 0 : i64, scratch_operands = 0 : i64, tpu.core_type = #tpu.core_type<tc>, window_params = [{transform_indices = @transform_0, window_bounds = array<i64: 64, 16>}, {pipeline_mode = #tpu.pipeline_mode<synchronous>, transform_indices = @transform_1, window_bounds = array<i64: 16, 64>}, {pipeline_mode = #tpu.pipeline_mode<synchronous>, transform_indices = @transform_2, window_bounds = array<i64: 1, 64>}, {transform_indices = @transform_3, window_bounds = array<i64: 64, 64>}, {transform_indices = @transform_4, window_bounds = array<i64: 1, 1, 64>}, {transform_indices = @transform_5, window_bounds = array<i64: 1, 1, 64>}]} {
    %c0 = arith.constant 0 : index
    %c0_0 = arith.constant 0 : index
    %0 = vector.load %arg1[%c0, %c0_0] : memref<64x16xbf16, #tpu.memory_space<vmem>>, vector<64x16xbf16>
    %c0_1 = arith.constant 0 : index
    %c0_2 = arith.constant 0 : index
    %1 = vector.load %arg2[%c0_1, %c0_2] : memref<16x64xbf16, #tpu.memory_space<vmem>>, vector<16x64xbf16>
    %cst = arith.constant dense<0.000000e+00> : vector<64x64xf32>
    %2 = tpu.matmul %0, %1, %cst {dimension_numbers = #tpu.dot_dimension_numbers<[1], [0], [0], [1], [0, 0, 1, 1], [], []>} : vector<64x16xbf16>, vector<16x64xbf16>, vector<64x64xf32> -> vector<64x64xf32>
    %c0_3 = arith.constant 0 : index
    %c0_4 = arith.constant 0 : index
    %3 = vector.load %arg3[%c0_3, %c0_4] : memref<1x64xf32, #tpu.memory_space<vmem>>, vector<1x64xf32>
    %4 = vector.broadcast %3 : vector<1x64xf32> to vector<64x64xf32>
    %5 = arith.addf %2, %4 : vector<64x64xf32>
    %c0_5 = arith.constant 0 : index
    %c0_6 = arith.constant 0 : index
    %6 = vector.load %arg4[%c0_5, %c0_6] : memref<64x64xf32, #tpu.memory_space<vmem>>, vector<64x64xf32>
    tpu.vector_store %arg4[%c0_5, %c0_6], %5 {strides = array<i32>} : memref<64x64xf32, #tpu.memory_space<vmem>>, vector<64x64xf32>,
    %cst_7 = arith.constant dense<0.000000e+00> : vector<64xf32>
    %7 = vector.multi_reduction <add>, %5, %cst_7 [0] : vector<64x64xf32> to vector<64xf32>
    %8 = vector.shape_cast %7 : vector<64xf32> to vector<1x64xf32>
    %c0_8 = arith.constant 0 : index
    %c0_9 = arith.constant 0 : index
    %c0_10 = arith.constant 0 : index
    %9 = vector.load %arg5[%c0_8, %c0_9, %c0_10] : memref<1x1x64xf32, #tpu.memory_space<vmem>>, vector<1x1x64xf32>
    %10 = vector.shape_cast %9 : vector<1x1x64xf32> to vector<1x64xf32>
    %11 = vector.shape_cast %8 : vector<1x64xf32> to vector<1x1x64xf32>
    tpu.vector_store %arg5[%c0_8, %c0_9, %c0_10], %11 {strides = array<i32>} : memref<1x1x64xf32, #tpu.memory_space<vmem>>, vector<1x1x64xf32>,
    %12 = arith.mulf %5, %5 : vector<64x64xf32>
    %cst_11 = arith.constant dense<0.000000e+00> : vector<64xf32>
    %13 = vector.multi_reduction <add>, %12, %cst_11 [0] : vector<64x64xf32> to vector<64xf32>
    %14 = vector.shape_cast %13 : vector<64xf32> to vector<1x64xf32>
    %c0_12 = arith.constant 0 : index
    %c0_13 = arith.constant 0 : index
    %c0_14 = arith.constant 0 : index
    %15 = vector.load %arg6[%c0_12, %c0_13, %c0_14] : memref<1x1x64xf32, #tpu.memory_space<vmem>>, vector<1x1x64xf32>
    %16 = vector.shape_cast %15 : vector<1x1x64xf32> to vector<1x64xf32>
    %17 = vector.shape_cast %14 : vector<1x64xf32> to vector<1x1x64xf32>
    tpu.vector_store %arg6[%c0_12, %c0_13, %c0_14], %17 {strides = array<i32>} : memref<1x1x64xf32, #tpu.memory_space<vmem>>, vector<1x1x64xf32>,
    return
  }
  func.func @transform_0(%arg0: i32) -> (i32, i32) {
    %c0_i32 = arith.constant 0 : i32
    %c0_i32_0 = arith.constant 0 : i32
    return %arg0, %c0_i32 : i32, i32
  }
  func.func @transform_1(%arg0: i32) -> (i32, i32) {
    %c0_i32 = arith.constant 0 : i32
    %c0_i32_0 = arith.constant 0 : i32
    %c0_i32_1 = arith.constant 0 : i32
    return %c0_i32, %c0_i32_0 : i32, i32
  }
  func.func @transform_2(%arg0: i32) -> (i32, i32) {
    %c0_i32 = arith.constant 0 : i32
    %c0_i32_0 = arith.constant 0 : i32
    %c0_i32_1 = arith.constant 0 : i32
    return %c0_i32, %c0_i32_0 : i32, i32
  }
  func.func @transform_3(%arg0: i32) -> (i32, i32) {
    %c0_i32 = arith.constant 0 : i32
    %c0_i32_0 = arith.constant 0 : i32
    return %arg0, %c0_i32 : i32, i32
  }
  func.func @transform_4(%arg0: i32) -> (i32, i32, i32) {
    %c0_i32 = arith.constant 0 : i32
    %c0_i32_0 = arith.constant 0 : i32
    %c0_i32_1 = arith.constant 0 : i32
    return %arg0, %c0_i32, %c0_i32_0 : i32, i32, i32
  }
  func.func @transform_5(%arg0: i32) -> (i32, i32, i32) {
    %c0_i32 = arith.constant 0 : i32
    %c0_i32_0 = arith.constant 0 : i32
    %c0_i32_1 = arith.constant 0 : i32
    return %arg0, %c0_i32, %c0_i32_0 : i32, i32, i32
  }
}

module attributes {stable_mosaic.version = 11 : i64} {
  func.func @_bn_add_relu_kernel(%arg0: i32, %arg1: memref<32x128xf32, #tpu.memory_space<vmem>>, %arg2: memref<32x128xf32, #tpu.memory_space<vmem>>, %arg3: memref<1x128xf32, #tpu.memory_space<vmem>>, %arg4: memref<1x128xf32, #tpu.memory_space<vmem>>, %arg5: memref<1x128xf32, #tpu.memory_space<vmem>>, %arg6: memref<1x128xf32, #tpu.memory_space<vmem>>, %arg7: memref<32x128xf32, #tpu.memory_space<vmem>>) attributes {dimension_semantics = [#tpu.dimension_semantics<parallel>], iteration_bounds = array<i64: 2>, scalar_prefetch = 0 : i64, scratch_operands = 0 : i64, tpu.core_type = #tpu.core_type<tc>, window_params = [{transform_indices = @transform_0, window_bounds = array<i64: 32, 128>}, {transform_indices = @transform_1, window_bounds = array<i64: 32, 128>}, {pipeline_mode = #tpu.pipeline_mode<synchronous>, transform_indices = @transform_2, window_bounds = array<i64: 1, 128>}, {pipeline_mode = #tpu.pipeline_mode<synchronous>, transform_indices = @transform_3, window_bounds = array<i64: 1, 128>}, {pipeline_mode = #tpu.pipeline_mode<synchronous>, transform_indices = @transform_4, window_bounds = array<i64: 1, 128>}, {pipeline_mode = #tpu.pipeline_mode<synchronous>, transform_indices = @transform_5, window_bounds = array<i64: 1, 128>}, {transform_indices = @transform_6, window_bounds = array<i64: 32, 128>}]} {
    %c0 = arith.constant 0 : index
    %c0_0 = arith.constant 0 : index
    %0 = vector.load %arg1[%c0, %c0_0] : memref<32x128xf32, #tpu.memory_space<vmem>>, vector<32x128xf32>
    %c0_1 = arith.constant 0 : index
    %c0_2 = arith.constant 0 : index
    %1 = vector.load %arg3[%c0_1, %c0_2] : memref<1x128xf32, #tpu.memory_space<vmem>>, vector<1x128xf32>
    %2 = vector.broadcast %1 : vector<1x128xf32> to vector<32x128xf32>
    %3 = arith.mulf %0, %2 : vector<32x128xf32>
    %c0_3 = arith.constant 0 : index
    %c0_4 = arith.constant 0 : index
    %4 = vector.load %arg4[%c0_3, %c0_4] : memref<1x128xf32, #tpu.memory_space<vmem>>, vector<1x128xf32>
    %5 = vector.broadcast %4 : vector<1x128xf32> to vector<32x128xf32>
    %6 = arith.addf %3, %5 : vector<32x128xf32>
    %cst = arith.constant 0.000000e+00 : f32
    %7 = vector.broadcast %cst : f32 to vector<32x128xf32>
    %8 = arith.maximumf %6, %7 : vector<32x128xf32>
    %c0_5 = arith.constant 0 : index
    %c0_6 = arith.constant 0 : index
    %9 = vector.load %arg2[%c0_5, %c0_6] : memref<32x128xf32, #tpu.memory_space<vmem>>, vector<32x128xf32>
    %c0_7 = arith.constant 0 : index
    %c0_8 = arith.constant 0 : index
    %10 = vector.load %arg5[%c0_7, %c0_8] : memref<1x128xf32, #tpu.memory_space<vmem>>, vector<1x128xf32>
    %11 = vector.broadcast %10 : vector<1x128xf32> to vector<32x128xf32>
    %12 = arith.mulf %9, %11 : vector<32x128xf32>
    %c0_9 = arith.constant 0 : index
    %c0_10 = arith.constant 0 : index
    %13 = vector.load %arg6[%c0_9, %c0_10] : memref<1x128xf32, #tpu.memory_space<vmem>>, vector<1x128xf32>
    %14 = vector.broadcast %13 : vector<1x128xf32> to vector<32x128xf32>
    %15 = arith.addf %12, %14 : vector<32x128xf32>
    %16 = arith.addf %8, %15 : vector<32x128xf32>
    %cst_11 = arith.constant 0.000000e+00 : f32
    %17 = vector.broadcast %cst_11 : f32 to vector<32x128xf32>
    %18 = arith.maximumf %16, %17 : vector<32x128xf32>
    %c0_12 = arith.constant 0 : index
    %c0_13 = arith.constant 0 : index
    %19 = vector.load %arg7[%c0_12, %c0_13] : memref<32x128xf32, #tpu.memory_space<vmem>>, vector<32x128xf32>
    tpu.vector_store %arg7[%c0_12, %c0_13], %18 {strides = array<i32>} : memref<32x128xf32, #tpu.memory_space<vmem>>, vector<32x128xf32>,
    return
  }
  func.func @transform_0(%arg0: i32) -> (i32, i32) {
    %c0_i32 = arith.constant 0 : i32
    %c0_i32_0 = arith.constant 0 : i32
    return %arg0, %c0_i32 : i32, i32
  }
  func.func @transform_1(%arg0: i32) -> (i32, i32) {
    %c0_i32 = arith.constant 0 : i32
    %c0_i32_0 = arith.constant 0 : i32
    return %arg0, %c0_i32 : i32, i32
  }
  func.func @transform_2(%arg0: i32) -> (i32, i32) {
    %c0_i32 = arith.constant 0 : i32
    %c0_i32_0 = arith.constant 0 : i32
    %c0_i32_1 = arith.constant 0 : i32
    return %c0_i32, %c0_i32_0 : i32, i32
  }
  func.func @transform_3(%arg0: i32) -> (i32, i32) {
    %c0_i32 = arith.constant 0 : i32
    %c0_i32_0 = arith.constant 0 : i32
    %c0_i32_1 = arith.constant 0 : i32
    return %c0_i32, %c0_i32_0 : i32, i32
  }
  func.func @transform_4(%arg0: i32) -> (i32, i32) {
    %c0_i32 = arith.constant 0 : i32
    %c0_i32_0 = arith.constant 0 : i32
    %c0_i32_1 = arith.constant 0 : i32
    return %c0_i32, %c0_i32_0 : i32, i32
  }
  func.func @transform_5(%arg0: i32) -> (i32, i32) {
    %c0_i32 = arith.constant 0 : i32
    %c0_i32_0 = arith.constant 0 : i32
    %c0_i32_1 = arith.constant 0 : i32
    return %c0_i32, %c0_i32_0 : i32, i32
  }
  func.func @transform_6(%arg0: i32) -> (i32, i32) {
    %c0_i32 = arith.constant 0 : i32
    %c0_i32_0 = arith.constant 0 : i32
    return %arg0, %c0_i32 : i32, i32
  }
}

module attributes {stable_mosaic.version = 11 : i64} {
  func.func @_conv3x3_kernel(%arg0: i32, %arg1: memref<1x18x8x48xbf16, #tpu.memory_space<vmem>>, %arg2: memref<3x48x16xbf16, #tpu.memory_space<vmem>>, %arg3: memref<1x16xf32, #tpu.memory_space<vmem>>, %arg4: memref<64x16xbf16, #tpu.memory_space<vmem>>, %arg5: memref<1x1x16xf32, #tpu.memory_space<vmem>>, %arg6: memref<1x1x16xf32, #tpu.memory_space<vmem>>) attributes {dimension_semantics = [#tpu.dimension_semantics<parallel>], iteration_bounds = array<i64: 2>, scalar_prefetch = 0 : i64, scratch_operands = 0 : i64, tpu.core_type = #tpu.core_type<tc>, window_params = [{transform_indices = @transform_0, window_bounds = array<i64: 1, 18, 8, 48>}, {pipeline_mode = #tpu.pipeline_mode<synchronous>, transform_indices = @transform_1, window_bounds = array<i64: 3, 48, 16>}, {pipeline_mode = #tpu.pipeline_mode<synchronous>, transform_indices = @transform_2, window_bounds = array<i64: 1, 16>}, {transform_indices = @transform_3, window_bounds = array<i64: 64, 16>}, {transform_indices = @transform_4, window_bounds = array<i64: 1, 1, 16>}, {transform_indices = @transform_5, window_bounds = array<i64: 1, 1, 16>}]} {
    %cst = arith.constant 0.000000e+00 : f32
    %0 = vector.broadcast %cst : f32 to vector<64x16xf32>
    %c0 = arith.constant 0 : index
    %c0_0 = arith.constant 0 : index
    %c0_1 = arith.constant 0 : index
    %c0_2 = arith.constant 0 : index
    %1 = vector.load %arg1[%c0, %c0_0, %c0_1, %c0_2] : memref<1x18x8x48xbf16, #tpu.memory_space<vmem>>, vector<1x8x8x48xbf16>
    %2 = vector.shape_cast %1 : vector<1x8x8x48xbf16> to vector<8x8x48xbf16>
    %3 = vector.shape_cast %2 : vector<8x8x48xbf16> to vector<64x48xbf16>
    %c0_3 = arith.constant 0 : index
    %c0_4 = arith.constant 0 : index
    %c0_5 = arith.constant 0 : index
    %4 = vector.load %arg2[%c0_3, %c0_4, %c0_5] : memref<3x48x16xbf16, #tpu.memory_space<vmem>>, vector<1x48x16xbf16>
    %5 = vector.shape_cast %4 : vector<1x48x16xbf16> to vector<48x16xbf16>
    %cst_6 = arith.constant dense<0.000000e+00> : vector<64x16xf32>
    %6 = tpu.matmul %3, %5, %cst_6 {dimension_numbers = #tpu.dot_dimension_numbers<[1], [0], [0], [1], [0, 0, 1, 1], [], []>} : vector<64x48xbf16>, vector<48x16xbf16>, vector<64x16xf32> -> vector<64x16xf32>
    %7 = arith.addf %0, %6 : vector<64x16xf32>
    %c0_7 = arith.constant 0 : index
    %c9 = arith.constant 9 : index
    %c0_8 = arith.constant 0 : index
    %c0_9 = arith.constant 0 : index
    %8 = vector.load %arg1[%c0_7, %c9, %c0_8, %c0_9] : memref<1x18x8x48xbf16, #tpu.memory_space<vmem>>, vector<1x8x8x48xbf16>
    %9 = vector.shape_cast %8 : vector<1x8x8x48xbf16> to vector<8x8x48xbf16>
    %10 = vector.shape_cast %9 : vector<8x8x48xbf16> to vector<64x48xbf16>
    %c1 = arith.constant 1 : index
    %c0_10 = arith.constant 0 : index
    %c0_11 = arith.constant 0 : index
    %11 = vector.load %arg2[%c1, %c0_10, %c0_11] : memref<3x48x16xbf16, #tpu.memory_space<vmem>>, vector<1x48x16xbf16>
    %12 = vector.shape_cast %11 : vector<1x48x16xbf16> to vector<48x16xbf16>
    %cst_12 = arith.constant dense<0.000000e+00> : vector<64x16xf32>
    %13 = tpu.matmul %10, %12, %cst_12 {dimension_numbers = #tpu.dot_dimension_numbers<[1], [0], [0], [1], [0, 0, 1, 1], [], []>} : vector<64x48xbf16>, vector<48x16xbf16>, vector<64x16xf32> -> vector<64x16xf32>
    %14 = arith.addf %7, %13 : vector<64x16xf32>
    %c0_13 = arith.constant 0 : index
    %c1_14 = arith.constant 1 : index
    %c0_15 = arith.constant 0 : index
    %c0_16 = arith.constant 0 : index
    %15 = vector.load %arg1[%c0_13, %c1_14, %c0_15, %c0_16] : memref<1x18x8x48xbf16, #tpu.memory_space<vmem>>, vector<1x8x8x48xbf16>
    %16 = vector.shape_cast %15 : vector<1x8x8x48xbf16> to vector<8x8x48xbf16>
    %17 = vector.shape_cast %16 : vector<8x8x48xbf16> to vector<64x48xbf16>
    %c2 = arith.constant 2 : index
    %c0_17 = arith.constant 0 : index
    %c0_18 = arith.constant 0 : index
    %18 = vector.load %arg2[%c2, %c0_17, %c0_18] : memref<3x48x16xbf16, #tpu.memory_space<vmem>>, vector<1x48x16xbf16>
    %19 = vector.shape_cast %18 : vector<1x48x16xbf16> to vector<48x16xbf16>
    %cst_19 = arith.constant dense<0.000000e+00> : vector<64x16xf32>
    %20 = tpu.matmul %17, %19, %cst_19 {dimension_numbers = #tpu.dot_dimension_numbers<[1], [0], [0], [1], [0, 0, 1, 1], [], []>} : vector<64x48xbf16>, vector<48x16xbf16>, vector<64x16xf32> -> vector<64x16xf32>
    %21 = arith.addf %14, %20 : vector<64x16xf32>
    %c0_20 = arith.constant 0 : index
    %c0_21 = arith.constant 0 : index
    %22 = vector.load %arg3[%c0_20, %c0_21] : memref<1x16xf32, #tpu.memory_space<vmem>>, vector<1x16xf32>
    %23 = vector.broadcast %22 : vector<1x16xf32> to vector<64x16xf32>
    %24 = arith.addf %21, %23 : vector<64x16xf32>
    %25 = arith.truncf %24 : vector<64x16xf32> to vector<64x16xbf16>
    %c0_22 = arith.constant 0 : index
    %c0_23 = arith.constant 0 : index
    %26 = vector.load %arg4[%c0_22, %c0_23] : memref<64x16xbf16, #tpu.memory_space<vmem>>, vector<64x16xbf16>
    tpu.vector_store %arg4[%c0_22, %c0_23], %25 {strides = array<i32>} : memref<64x16xbf16, #tpu.memory_space<vmem>>, vector<64x16xbf16>,
    %cst_24 = arith.constant dense<0.000000e+00> : vector<16xf32>
    %27 = vector.multi_reduction <add>, %24, %cst_24 [0] : vector<64x16xf32> to vector<16xf32>
    %28 = vector.shape_cast %27 : vector<16xf32> to vector<1x16xf32>
    %c0_25 = arith.constant 0 : index
    %c0_26 = arith.constant 0 : index
    %c0_27 = arith.constant 0 : index
    %29 = vector.load %arg5[%c0_25, %c0_26, %c0_27] : memref<1x1x16xf32, #tpu.memory_space<vmem>>, vector<1x1x16xf32>
    %30 = vector.shape_cast %29 : vector<1x1x16xf32> to vector<1x16xf32>
    %31 = vector.shape_cast %28 : vector<1x16xf32> to vector<1x1x16xf32>
    tpu.vector_store %arg5[%c0_25, %c0_26, %c0_27], %31 {strides = array<i32>} : memref<1x1x16xf32, #tpu.memory_space<vmem>>, vector<1x1x16xf32>,
    %32 = arith.mulf %24, %24 : vector<64x16xf32>
    %cst_28 = arith.constant dense<0.000000e+00> : vector<16xf32>
    %33 = vector.multi_reduction <add>, %32, %cst_28 [0] : vector<64x16xf32> to vector<16xf32>
    %34 = vector.shape_cast %33 : vector<16xf32> to vector<1x16xf32>
    %c0_29 = arith.constant 0 : index
    %c0_30 = arith.constant 0 : index
    %c0_31 = arith.constant 0 : index
    %35 = vector.load %arg6[%c0_29, %c0_30, %c0_31] : memref<1x1x16xf32, #tpu.memory_space<vmem>>, vector<1x1x16xf32>
    %36 = vector.shape_cast %35 : vector<1x1x16xf32> to vector<1x16xf32>
    %37 = vector.shape_cast %34 : vector<1x16xf32> to vector<1x1x16xf32>
    tpu.vector_store %arg6[%c0_29, %c0_30, %c0_31], %37 {strides = array<i32>} : memref<1x1x16xf32, #tpu.memory_space<vmem>>, vector<1x1x16xf32>,
    return
  }
  func.func @transform_0(%arg0: i32) -> (i32, i32, i32, i32) {
    %c0_i32 = arith.constant 0 : i32
    %c0_i32_0 = arith.constant 0 : i32
    %c0_i32_1 = arith.constant 0 : i32
    %c0_i32_2 = arith.constant 0 : i32
    return %arg0, %c0_i32, %c0_i32_0, %c0_i32_1 : i32, i32, i32, i32
  }
  func.func @transform_1(%arg0: i32) -> (i32, i32, i32) {
    %c0_i32 = arith.constant 0 : i32
    %c0_i32_0 = arith.constant 0 : i32
    %c0_i32_1 = arith.constant 0 : i32
    %c0_i32_2 = arith.constant 0 : i32
    return %c0_i32, %c0_i32_0, %c0_i32_1 : i32, i32, i32
  }
  func.func @transform_2(%arg0: i32) -> (i32, i32) {
    %c0_i32 = arith.constant 0 : i32
    %c0_i32_0 = arith.constant 0 : i32
    %c0_i32_1 = arith.constant 0 : i32
    return %c0_i32, %c0_i32_0 : i32, i32
  }
  func.func @transform_3(%arg0: i32) -> (i32, i32) {
    %c0_i32 = arith.constant 0 : i32
    %c0_i32_0 = arith.constant 0 : i32
    return %arg0, %c0_i32 : i32, i32
  }
  func.func @transform_4(%arg0: i32) -> (i32, i32, i32) {
    %c0_i32 = arith.constant 0 : i32
    %c0_i32_0 = arith.constant 0 : i32
    %c0_i32_1 = arith.constant 0 : i32
    return %arg0, %c0_i32, %c0_i32_0 : i32, i32, i32
  }
  func.func @transform_5(%arg0: i32) -> (i32, i32, i32) {
    %c0_i32 = arith.constant 0 : i32
    %c0_i32_0 = arith.constant 0 : i32
    %c0_i32_1 = arith.constant 0 : i32
    return %arg0, %c0_i32, %c0_i32_0 : i32, i32, i32
  }
}

module attributes {stable_mosaic.version = 11 : i64} {
  func.func @_matmul_stats_kernel(%arg0: i32, %arg1: memref<64x16xbf16, #tpu.memory_space<vmem>>, %arg2: memref<16x64xbf16, #tpu.memory_space<vmem>>, %arg3: memref<1x64xf32, #tpu.memory_space<vmem>>, %arg4: memref<1x16xf32, #tpu.memory_space<vmem>>, %arg5: memref<1x16xf32, #tpu.memory_space<vmem>>, %arg6: memref<64x64xf32, #tpu.memory_space<vmem>>, %arg7: memref<1x1x64xf32, #tpu.memory_space<vmem>>, %arg8: memref<1x1x64xf32, #tpu.memory_space<vmem>>) attributes {dimension_semantics = [#tpu.dimension_semantics<parallel>], iteration_bounds = array<i64: 2>, scalar_prefetch = 0 : i64, scratch_operands = 0 : i64, tpu.core_type = #tpu.core_type<tc>, window_params = [{transform_indices = @transform_0, window_bounds = array<i64: 64, 16>}, {pipeline_mode = #tpu.pipeline_mode<synchronous>, transform_indices = @transform_1, window_bounds = array<i64: 16, 64>}, {pipeline_mode = #tpu.pipeline_mode<synchronous>, transform_indices = @transform_2, window_bounds = array<i64: 1, 64>}, {pipeline_mode = #tpu.pipeline_mode<synchronous>, transform_indices = @transform_3, window_bounds = array<i64: 1, 16>}, {pipeline_mode = #tpu.pipeline_mode<synchronous>, transform_indices = @transform_4, window_bounds = array<i64: 1, 16>}, {transform_indices = @transform_5, window_bounds = array<i64: 64, 64>}, {transform_indices = @transform_6, window_bounds = array<i64: 1, 1, 64>}, {transform_indices = @transform_7, window_bounds = array<i64: 1, 1, 64>}]} {
    %c0 = arith.constant 0 : index
    %c0_0 = arith.constant 0 : index
    %0 = vector.load %arg1[%c0, %c0_0] : memref<64x16xbf16, #tpu.memory_space<vmem>>, vector<64x16xbf16>
    %1 = arith.extf %0 : vector<64x16xbf16> to vector<64x16xf32>
    %c0_1 = arith.constant 0 : index
    %c0_2 = arith.constant 0 : index
    %2 = vector.load %arg4[%c0_1, %c0_2] : memref<1x16xf32, #tpu.memory_space<vmem>>, vector<1x16xf32>
    %3 = vector.broadcast %2 : vector<1x16xf32> to vector<64x16xf32>
    %4 = arith.mulf %1, %3 : vector<64x16xf32>
    %c0_3 = arith.constant 0 : index
    %c0_4 = arith.constant 0 : index
    %5 = vector.load %arg5[%c0_3, %c0_4] : memref<1x16xf32, #tpu.memory_space<vmem>>, vector<1x16xf32>
    %6 = vector.broadcast %5 : vector<1x16xf32> to vector<64x16xf32>
    %7 = arith.addf %4, %6 : vector<64x16xf32>
    %cst = arith.constant 0.000000e+00 : f32
    %8 = vector.broadcast %cst : f32 to vector<64x16xf32>
    %9 = arith.maximumf %7, %8 : vector<64x16xf32>
    %10 = arith.truncf %9 : vector<64x16xf32> to vector<64x16xbf16>
    %c0_5 = arith.constant 0 : index
    %c0_6 = arith.constant 0 : index
    %11 = vector.load %arg2[%c0_5, %c0_6] : memref<16x64xbf16, #tpu.memory_space<vmem>>, vector<16x64xbf16>
    %cst_7 = arith.constant dense<0.000000e+00> : vector<64x64xf32>
    %12 = tpu.matmul %10, %11, %cst_7 {dimension_numbers = #tpu.dot_dimension_numbers<[1], [0], [0], [1], [0, 0, 1, 1], [], []>} : vector<64x16xbf16>, vector<16x64xbf16>, vector<64x64xf32> -> vector<64x64xf32>
    %c0_8 = arith.constant 0 : index
    %c0_9 = arith.constant 0 : index
    %13 = vector.load %arg3[%c0_8, %c0_9] : memref<1x64xf32, #tpu.memory_space<vmem>>, vector<1x64xf32>
    %14 = vector.broadcast %13 : vector<1x64xf32> to vector<64x64xf32>
    %15 = arith.addf %12, %14 : vector<64x64xf32>
    %c0_10 = arith.constant 0 : index
    %c0_11 = arith.constant 0 : index
    %16 = vector.load %arg6[%c0_10, %c0_11] : memref<64x64xf32, #tpu.memory_space<vmem>>, vector<64x64xf32>
    tpu.vector_store %arg6[%c0_10, %c0_11], %15 {strides = array<i32>} : memref<64x64xf32, #tpu.memory_space<vmem>>, vector<64x64xf32>,
    %cst_12 = arith.constant dense<0.000000e+00> : vector<64xf32>
    %17 = vector.multi_reduction <add>, %15, %cst_12 [0] : vector<64x64xf32> to vector<64xf32>
    %18 = vector.shape_cast %17 : vector<64xf32> to vector<1x64xf32>
    %c0_13 = arith.constant 0 : index
    %c0_14 = arith.constant 0 : index
    %c0_15 = arith.constant 0 : index
    %19 = vector.load %arg7[%c0_13, %c0_14, %c0_15] : memref<1x1x64xf32, #tpu.memory_space<vmem>>, vector<1x1x64xf32>
    %20 = vector.shape_cast %19 : vector<1x1x64xf32> to vector<1x64xf32>
    %21 = vector.shape_cast %18 : vector<1x64xf32> to vector<1x1x64xf32>
    tpu.vector_store %arg7[%c0_13, %c0_14, %c0_15], %21 {strides = array<i32>} : memref<1x1x64xf32, #tpu.memory_space<vmem>>, vector<1x1x64xf32>,
    %22 = arith.mulf %15, %15 : vector<64x64xf32>
    %cst_16 = arith.constant dense<0.000000e+00> : vector<64xf32>
    %23 = vector.multi_reduction <add>, %22, %cst_16 [0] : vector<64x64xf32> to vector<64xf32>
    %24 = vector.shape_cast %23 : vector<64xf32> to vector<1x64xf32>
    %c0_17 = arith.constant 0 : index
    %c0_18 = arith.constant 0 : index
    %c0_19 = arith.constant 0 : index
    %25 = vector.load %arg8[%c0_17, %c0_18, %c0_19] : memref<1x1x64xf32, #tpu.memory_space<vmem>>, vector<1x1x64xf32>
    %26 = vector.shape_cast %25 : vector<1x1x64xf32> to vector<1x64xf32>
    %27 = vector.shape_cast %24 : vector<1x64xf32> to vector<1x1x64xf32>
    tpu.vector_store %arg8[%c0_17, %c0_18, %c0_19], %27 {strides = array<i32>} : memref<1x1x64xf32, #tpu.memory_space<vmem>>, vector<1x1x64xf32>,
    return
  }
  func.func @transform_0(%arg0: i32) -> (i32, i32) {
    %c0_i32 = arith.constant 0 : i32
    %c0_i32_0 = arith.constant 0 : i32
    return %arg0, %c0_i32 : i32, i32
  }
  func.func @transform_1(%arg0: i32) -> (i32, i32) {
    %c0_i32 = arith.constant 0 : i32
    %c0_i32_0 = arith.constant 0 : i32
    %c0_i32_1 = arith.constant 0 : i32
    return %c0_i32, %c0_i32_0 : i32, i32
  }
  func.func @transform_2(%arg0: i32) -> (i32, i32) {
    %c0_i32 = arith.constant 0 : i32
    %c0_i32_0 = arith.constant 0 : i32
    %c0_i32_1 = arith.constant 0 : i32
    return %c0_i32, %c0_i32_0 : i32, i32
  }
  func.func @transform_3(%arg0: i32) -> (i32, i32) {
    %c0_i32 = arith.constant 0 : i32
    %c0_i32_0 = arith.constant 0 : i32
    %c0_i32_1 = arith.constant 0 : i32
    return %c0_i32, %c0_i32_0 : i32, i32
  }
  func.func @transform_4(%arg0: i32) -> (i32, i32) {
    %c0_i32 = arith.constant 0 : i32
    %c0_i32_0 = arith.constant 0 : i32
    %c0_i32_1 = arith.constant 0 : i32
    return %c0_i32, %c0_i32_0 : i32, i32
  }
  func.func @transform_5(%arg0: i32) -> (i32, i32) {
    %c0_i32 = arith.constant 0 : i32
    %c0_i32_0 = arith.constant 0 : i32
    return %arg0, %c0_i32 : i32, i32
  }
  func.func @transform_6(%arg0: i32) -> (i32, i32, i32) {
    %c0_i32 = arith.constant 0 : i32
    %c0_i32_0 = arith.constant 0 : i32
    %c0_i32_1 = arith.constant 0 : i32
    return %arg0, %c0_i32, %c0_i32_0 : i32, i32, i32
  }
  func.func @transform_7(%arg0: i32) -> (i32, i32, i32) {
    %c0_i32 = arith.constant 0 : i32
    %c0_i32_0 = arith.constant 0 : i32
    %c0_i32_1 = arith.constant 0 : i32
    return %arg0, %c0_i32, %c0_i32_0 : i32, i32, i32
  }
}

</mosaic_0001>

<bundles_post_ra>
// kernel: res_bottleneck_block.6
= control target key start
LH: loop header
LB: loop body
LE: loop exit
PB: predicated region body
PF: predicated region fallthrough
CT: control target
= control target key end

     0   :  { %s1248_s18 = smov 0   ;;  %s1562_s0 = inlined_call_operand.vmem [shape: bf16[512,16], index: 0, kind: input, shape index: {}]   ;;  %s1563_s1 = inlined_call_operand.vmem [shape: bf16[16,16], index: 1, kind: input, shape index: {}]   ;;  %s1564_s2 = inlined_call_operand.vmem [shape: f32[1,16], index: 2, kind: input, shape index: {}]   ;;  %s1565_s3 = inlined_call_operand.vmem [shape: bf16[512,16], index: 3, kind: output, shape index: {0}]   ;;  %s1566_s4 = inlined_call_operand.vmem [shape: f32[2,1,16], index: 4, kind: output, shape index: {1}]   ;;  %s1567_s5 = inlined_call_operand.vmem [shape: f32[2,1,16], index: 5, kind: output, shape index: {2}]  }
   0x1 LB: > { %s1254_s19 = sadd.s32 4294967295, %s1216_s18   ;;  %p1027_p0 = scmp.ge.s32.totalorder %s1216_s18, 1  ;;  %s1216_s18 = sphi %s1248_s18, %s16_s18  }
   0x2   : > { %p193_p1 = scmp.lt.s32.totalorder %s1216_s18, 3 }
   0x4   : > { %p194_p2 = pnand %p1027_p0, %p193_p1 }
   0x5   : > { %s1028_s22 = sshll.u32 (!%p194_p2), %s1254_s19, 5  ;;  %p239_p4 = scmp.lt.s32.totalorder (!%p194_p2), %s1254_s19, 1 }
   0x6   : > { %197 = sbr.rel (%p194_p2) target bundleno = 295 (0x127), region = 32  ;;  %p228_p3 = scmp.lt.s32.totalorder (!%p194_p2), %s1028_s22, 63 }
   0xb   : > { %v1193_v0 = vld [vmem:[%s1563_s1] sm:$0xff]   ;;  %s1569_s22 = smov (!%p228_p3, %s1028_s22), 63  ;;  %vm373_vm0 = vcmask 130048   ;;  %vm711_vm1 = vcmask 125952   ;;  %s1571_s19 = smov (!%p239_p4, %s1254_s19), 1  ;;  %vm813_vm2 = vcmask 122880  }
   0xc   : > { %1149 = vmatprep.subr.bf16.mxu0 %v1193_v0  ;;  %1183 = vmatprep.subr.bf16.mxu1 %v1193_v0  ;;  %s1029_s23 = sshll.u32 %s1569_s22, 2  ;;  %v1307_v17 = vld [vmem:[%s1564_s2] ss:$0 sm:$0xff]  ;;  %s241_s9 = scalar_lea.vmem %s1566_s4, %s1571_s19 }
   0xd   : > { %1150 = vmatpush3.bf16.msra.mxu0 %v1193_v0  ;;  %1184 = vmatpush3.bf16.msra.mxu1 %v1193_v0  ;;  %s1270_s26 = scalar_lea.vmem %s1562_s0, %s1029_s23  ;;  %s1315_s6 = scalar_lea.vmem %s1565_s3, %s1029_s23 }
   0xe   : > { %v1194_v1 = vld [vmem:[%s1270_s26] sm:$0xff]   ;;  %v1195_v2 = vld [vmem:[%s1270_s26 + $0x8] sm:$0xff]   ;;  %v1196_v3 = vld [vmem:[%s1270_s26 + $0x10] sm:$0xff]   ;;  %s244_s12 = scalar_lea.vmem %s1567_s5, %s1571_s19 }
   0xf   : > { %1151 = vmatprep.mubr.msk.bf16.mxu0 %vm373_vm0, %v1194_v1  ;;  %v1197_v4 = vld [vmem:[%s1270_s26 + $0x18] sm:$0xff]   ;;  %v1198_v5 = vld [vmem:[%s1270_s26 + $0x20] sm:$0xff]   ;;  %v1203_v7 = vld [vmem:[%s1270_s26 + $0x48] sm:$0xff]  }
  0x10   : > { %1152 = vmatmul.mubr.msk.bf16.vlgmr.msra.gmra.mxu0 %vm373_vm0, %v1195_v2  ;;  %v1202_v6 = vld [vmem:[%s1270_s26 + $0x40] sm:$0xff]   ;;  %v1204_v8 = vld [vmem:[%s1270_s26 + $0x50] sm:$0xff]   ;;  %v1199_v9 = vld [vmem:[%s1270_s26 + $0x28] sm:$0xff]  }
  0x11   : > { %1155 = vmatprep.mubr.msk.bf16.mxu0 %vm373_vm0, %v1196_v3  ;;  %1167 = vmatprep.mubr.msk.bf16.mxu1 %vm373_vm0, %v1202_v6  ;;  %v1205_v10 = vld [vmem:[%s1270_s26 + $0x58] sm:$0xff]   ;;  %v1200_v11 = vld [vmem:[%s1270_s26 + $0x30] sm:$0xff]   ;;  %v1206_v12 = vld [vmem:[%s1270_s26 + $0x60] sm:$0xff]  }
  0x12   : > { %1168 = vmatmul.mubr.msk.bf16.vlgmr.msra.gmra.mxu1 %vm373_vm0, %v1203_v7  ;;  %v1201_v13 = vld [vmem:[%s1270_s26 + $0x38] sm:$0xff]   ;;  %v1207_v14 = vld [vmem:[%s1270_s26 + $0x68] sm:$0xff]   ;;  %v1208_v15 = vld [vmem:[%s1270_s26 + $0x70] sm:$0xff]  }
  0x13   : > { %1171 = vmatprep.mubr.msk.bf16.mxu1 %vm373_vm0, %v1204_v8  ;;  %v1209_v16 = vld [vmem:[%s1270_s26 + $0x78] sm:$0xff]  }
  0x18   : > { %1156 = vmatmul.mubr.msk.bf16.gmra.mxu0 %vm373_vm0, %v1197_v4 }
  0x19   : > { %1159 = vmatprep.mubr.msk.bf16.mxu0 %vm373_vm0, %v1198_v5 }
  0x1a   : > { %1172 = vmatmul.mubr.msk.bf16.gmra.mxu1 %vm373_vm0, %v1205_v10 }
  0x1b   : > { %1175 = vmatprep.mubr.msk.bf16.mxu1 %vm373_vm0, %v1206_v12 }
  0x20   : > { %1160 = vmatmul.mubr.msk.bf16.gmra.mxu0 %vm373_vm0, %v1199_v9 }
  0x21   : > { %1163 = vmatprep.mubr.msk.bf16.mxu0 %vm373_vm0, %v1200_v11 }
  0x22   : > { %1176 = vmatmul.mubr.msk.bf16.gmra.mxu1 %vm373_vm0, %v1207_v14 }
  0x23   : > { %1179 = vmatprep.mubr.msk.bf16.mxu1 %vm373_vm0, %v1208_v15 }
  0x28   : > { %1164 = vmatmul.mubr.msk.bf16.gmra.mxu0 %vm373_vm0, %v1201_v13 }
  0x2a   : > { %1180 = vmatmul.mubr.msk.bf16.gmra.mxu1 %vm373_vm0, %v1209_v16 }
  0xd0   : > { %v1153_v18 = vpop.f32.mrf.mxu0 }
  0xd1   : > { %v465_v19 = vadd.f32 %v1153_v18, %v1307_v17 }
  0xd2   : > { %v456_v20 = vpop.f32.mrf.mxu0  ;;  %v1169_v33 = vpop.f32.mrf.mxu1 }
  0xd3   : > { %v1102_v21 = vpack.c.bf16 %v465_v19, %v465_v19  ;;  %v457_v22 = vadd.f32 %v1307_v17, %v456_v20  ;;  %v817_v29 = vmul.f32 %v465_v19, %v465_v19  ;;  %v747_v38 = vsel %vm373_vm0, %v465_v19, 0.0 }
  0xd4   : > { %v1154_v23 = vpop.f32.mrf.mxu0  ;;  %v1331_v41 = vadd.f32 %v1169_v33, %v1307_v17  ;;  %v520_v42 = vpop.f32.mrf.mxu1 }
  0xd5   : > { %714 = vst.msk [vmem:[%s1315_s6 + $0x8] sm:$0xf] %vm711_vm1, %v1102_v21  ;;  %v1100_v24 = vpack.c.bf16 %v457_v22, %v457_v22  ;;  %v468_v25 = vadd.f32 %v1154_v23, %v1307_v17  ;;  %v815_v27 = vmul.f32 %v457_v22, %v457_v22  ;;  %v744_v30 = vsel %vm373_vm0, %v457_v22, 0.0 }
  0xd6   : > { %v459_v26 = vpop.f32.mrf.mxu0  ;;  %v1118_v51 = vpack.c.bf16 %v1331_v41, %v1331_v41  ;;  %v1340_v52 = vpop.f32.mrf.mxu1  ;;  %v850_v53 = vsel %vm373_vm0, %v817_v29, 0.0  ;;  %v1363_v9 = vadd.f32 %v1307_v17, %v520_v42 }
  0xd7   : > { %712 = vst.msk [vmem:[%s1315_s6] sm:$0xf] %vm711_vm1, %v1100_v24  ;;  %v460_v28 = vadd.f32 %v1307_v17, %v459_v26  ;;  %v1103_v31 = vpack.c.bf16 %v468_v25, %v468_v25  ;;  %v847_v43 = vsel %vm373_vm0, %v815_v27, 0.0  ;;  %v818_v44 = vmul.f32 %v468_v25, %v468_v25 }
  0xd8   : > { %v1157_v32 = vpop.f32.mrf.mxu0  ;;  %v749_v54 = vsel %vm373_vm0, %v468_v25, 0.0  ;;  %730 = vst.msk [vmem:[%s1315_s6 + $0x48] sm:$0xf] %vm711_vm1, %v1118_v51  ;;  %v1349_v60 = vpop.f32.mrf.mxu1  ;;  %v1116_v24 = vpack.c.bf16 %v1363_v9, %v1363_v9 }
  0xd9   : > { %v1101_v34 = vpack.c.bf16 %v460_v28, %v460_v28  ;;  %v745_v35 = vsel %vm373_vm0, %v460_v28, 0.0  ;;  %v816_v36 = vmul.f32 %v460_v28, %v460_v28  ;;  %v481_v37 = vadd.f32 %v1157_v32, %v1307_v17  ;;  %715 = vst.msk [vmem:[%s1315_s6 + $0xc] sm:$0xf] %vm711_vm1, %v1103_v31 }
  0xda   : > { %v746_v39 = vadd.f32 %v745_v35, %v744_v30  ;;  %v472_v40 = vpop.f32.mrf.mxu0  ;;  %v852_v61 = vsel %vm373_vm0, %v818_v44, 0.0  ;;  %v1356_v5 = vpop.f32.mrf.mxu1  ;;  %728 = vst.msk [vmem:[%s1315_s6 + $0x40] sm:$0xf] %vm711_vm1, %v1116_v24  ;;  %v524_v24 = vadd.f32 %v1307_v17, %v1349_v60 }
  0xdb   : > { %713 = vst.msk [vmem:[%s1315_s6 + $0x4] sm:$0xf] %vm711_vm1, %v1101_v34  ;;  %v848_v45 = vsel %vm373_vm0, %v816_v36, 0.0  ;;  %v1106_v46 = vpack.c.bf16 %v481_v37, %v481_v37  ;;  %v473_v49 = vadd.f32 %v1307_v17, %v472_v40  ;;  %v821_v6 = vmul.f32 %v481_v37, %v481_v37 }
  0xdc   : > { %v748_v47 = vadd.f32 %v747_v38, %v746_v39  ;;  %v849_v48 = vadd.f32 %v848_v45, %v847_v43  ;;  %v1158_v50 = vpop.f32.mrf.mxu0  ;;  %v1366_v15 = vpop.f32.mrf.mxu1  ;;  %v755_v16 = vsel %vm373_vm0, %v481_v37, 0.0 }
  0xdd   : > { %718 = vst.msk [vmem:[%s1315_s6 + $0x18] sm:$0xf] %vm711_vm1, %v1106_v46  ;;  %v484_v55 = vadd.f32 %v1158_v50, %v1307_v17  ;;  %v1104_v57 = vpack.c.bf16 %v473_v49, %v473_v49  ;;  %v751_v62 = vsel %vm373_vm0, %v473_v49, 0.0  ;;  %v819_v63 = vmul.f32 %v473_v49, %v473_v49 }
  0xde   : > { %v851_v56 = vadd.f32 %v850_v53, %v849_v48  ;;  %v750_v58 = vadd.f32 %v749_v54, %v748_v47  ;;  %v475_v59 = vpop.f32.mrf.mxu0  ;;  %v1375_v25 = vpop.f32.mrf.mxu1  ;;  %v858_v29 = vsel %vm373_vm0, %v821_v6, 0.0  ;;  %v1398_v48 = vadd.f32 %v1340_v52, %v1307_v17 }
  0xdf   : > { %v1107_v0 = vpack.c.bf16 %v484_v55, %v484_v55  ;;  %716 = vst.msk [vmem:[%s1315_s6 + $0x10] sm:$0xf] %vm711_vm1, %v1104_v57  ;;  %v476_v3 = vadd.f32 %v1307_v17, %v475_v59  ;;  %v854_v7 = vsel %vm373_vm0, %v819_v63, 0.0  ;;  %v822_v20 = vmul.f32 %v484_v55, %v484_v55 }
  0xe0   : > { %v752_v1 = vadd.f32 %v751_v62, %v750_v58  ;;  %v853_v2 = vadd.f32 %v852_v61, %v851_v56  ;;  %v1161_v4 = vpop.f32.mrf.mxu0  ;;  %v757_v30 = vsel %vm373_vm0, %v484_v55, 0.0  ;;  %v1384_v34 = vpop.f32.mrf.mxu1 }
  0xe1   : > { %719 = vst.msk [vmem:[%s1315_s6 + $0x1c] sm:$0xf] %vm711_vm1, %v1107_v0  ;;  %v497_v8 = vadd.f32 %v1161_v4, %v1307_v17  ;;  %v1105_v11 = vpack.c.bf16 %v476_v3, %v476_v3  ;;  %v753_v12 = vsel %vm373_vm0, %v476_v3, 0.0  ;;  %v820_v13 = vmul.f32 %v476_v3, %v476_v3 }
  0xe2   : > { %v855_v10 = vadd.f32 %v854_v7, %v853_v2  ;;  %v488_v14 = vpop.f32.mrf.mxu0  ;;  %v754_v18 = vadd.f32 %v753_v12, %v752_v1  ;;  %v860_v38 = vsel %vm373_vm0, %v822_v20, 0.0  ;;  %v1391_v44 = vpop.f32.mrf.mxu1  ;;  %v1119_v0 = vpack.c.bf16 %v1398_v48, %v1398_v48 }
  0xe3   : > { %v1110_v19 = vpack.c.bf16 %v497_v8, %v497_v8  ;;  %717 = vst.msk [vmem:[%s1315_s6 + $0x14] sm:$0xf] %vm711_vm1, %v1105_v11  ;;  %v856_v21 = vsel %vm373_vm0, %v820_v13, 0.0  ;;  %v489_v22 = vadd.f32 %v1307_v17, %v488_v14  ;;  %v825_v39 = vmul.f32 %v497_v8, %v497_v8 }
  0xe4   : > { %v1162_v23 = vpop.f32.mrf.mxu0  ;;  %v756_v26 = vadd.f32 %v755_v16, %v754_v18  ;;  %v857_v27 = vadd.f32 %v856_v21, %v855_v10  ;;  %v1402_v55 = vpop.f32.mrf.mxu1  ;;  %v763_v56 = vsel %vm373_vm0, %v497_v8, 0.0  ;;  %731 = vst.msk [vmem:[%s1315_s6 + $0x4c] sm:$0xf] %vm711_vm1, %v1119_v0 }
  0xe5   : > { %722 = vst.msk [vmem:[%s1315_s6 + $0x28] sm:$0xf] %vm711_vm1, %v1110_v19  ;;  %v500_v28 = vadd.f32 %v1162_v23, %v1307_v17  ;;  %v1108_v31 = vpack.c.bf16 %v489_v22, %v489_v22  ;;  %v823_v32 = vmul.f32 %v489_v22, %v489_v22  ;;  %v759_v40 = vsel %vm373_vm0, %v489_v22, 0.0 }
  0xe6   : > { %v491_v33 = vpop.f32.mrf.mxu0  ;;  %v859_v35 = vadd.f32 %v858_v29, %v857_v27  ;;  %v758_v36 = vadd.f32 %v757_v30, %v756_v26  ;;  %v1411_v1 = vpop.f32.mrf.mxu1  ;;  %v866_v6 = vsel %vm373_vm0, %v825_v39, 0.0  ;;  %v1433_v26 = vadd.f32 %v1356_v5, %v1307_v17 }
  0xe7   : > { %v1111_v37 = vpack.c.bf16 %v500_v28, %v500_v28  ;;  %720 = vst.msk [vmem:[%s1315_s6 + $0x20] sm:$0xf] %vm711_vm1, %v1108_v31  ;;  %v492_v42 = vadd.f32 %v1307_v17, %v491_v33  ;;  %v862_v49 = vsel %vm373_vm0, %v823_v32, 0.0  ;;  %v826_v61 = vmul.f32 %v500_v28, %v500_v28 }
  0xe8   : > { %v1165_v43 = vpop.f32.mrf.mxu0  ;;  %v760_v45 = vadd.f32 %v759_v40, %v758_v36  ;;  %v861_v46 = vadd.f32 %v860_v38, %v859_v35  ;;  %v765_v7 = vsel %vm373_vm0, %v500_v28, 0.0  ;;  %v1420_v16 = vpop.f32.mrf.mxu1  ;;  %v1117_v33 = vpack.c.bf16 %v524_v24, %v524_v24 }
  0xe9   : > { %723 = vst.msk [vmem:[%s1315_s6 + $0x2c] sm:$0xf] %vm711_vm1, %v1111_v37  ;;  %v513_v47 = vadd.f32 %v1165_v43, %v1307_v17  ;;  %v1109_v50 = vpack.c.bf16 %v492_v42, %v492_v42  ;;  %v761_v51 = vsel %vm373_vm0, %v492_v42, 0.0  ;;  %v824_v53 = vmul.f32 %v492_v42, %v492_v42 }
  0xea   : > { %v504_v54 = vpop.f32.mrf.mxu0  ;;  %v863_v57 = vadd.f32 %v862_v49, %v861_v46  ;;  %v762_v58 = vadd.f32 %v761_v51, %v760_v45  ;;  %v868_v18 = vsel %vm373_vm0, %v826_v61, 0.0  ;;  %v1437_v35 = vpop.f32.mrf.mxu1  ;;  %v1122_v37 = vpack.c.bf16 %v1433_v26, %v1433_v26  ;;  %729 = vst.msk [vmem:[%s1315_s6 + $0x44] sm:$0xf] %vm711_vm1, %v1117_v33 }
  0xeb   : > { %v1114_v59 = vpack.c.bf16 %v513_v47, %v513_v47  ;;  %721 = vst.msk [vmem:[%s1315_s6 + $0x24] sm:$0xf] %vm711_vm1, %v1109_v50  ;;  %v864_v52 = vsel %vm373_vm0, %v824_v53, 0.0  ;;  %v505_v62 = vadd.f32 %v1307_v17, %v504_v54  ;;  %v829_v19 = vmul.f32 %v513_v47, %v513_v47 }
  0xec   : > { %v1166_v63 = vpop.f32.mrf.mxu0  ;;  %v764_v2 = vadd.f32 %v763_v56, %v762_v58  ;;  %v865_v3 = vadd.f32 %v864_v52, %v863_v57  ;;  %v771_v36 = vsel %vm373_vm0, %v513_v47, 0.0  ;;  %v831_v39 = vmul.f32 %v1363_v9, %v1363_v9  ;;  %734 = vst.msk [vmem:[%s1315_s6 + $0x58] sm:$0xf] %vm711_vm1, %v1122_v37  ;;  %v568_v54 = vpop.f32.mrf.mxu1 }
  0xed   : > { %726 = vst.msk [vmem:[%s1315_s6 + $0x38] sm:$0xf] %vm711_vm1, %v1114_v59  ;;  %v516_v4 = vadd.f32 %v1166_v63, %v1307_v17  ;;  %v1112_v8 = vpack.c.bf16 %v505_v62, %v505_v62  ;;  %v827_v10 = vmul.f32 %v505_v62, %v505_v62  ;;  %v767_v20 = vsel %vm373_vm0, %v505_v62, 0.0 }
  0xee   : > { %v507_v11 = vpop.f32.mrf.mxu0  ;;  %v867_v12 = vadd.f32 %v866_v6, %v865_v3  ;;  %v766_v13 = vadd.f32 %v765_v7, %v764_v2  ;;  %v874_v38 = vsel %vm373_vm0, %v829_v19, 0.0  ;;  %v537_v45 = vadd.f32 %v1307_v17, %v1366_v15  ;;  %v1182_v2 = vpop.f32.mrf.mxu1 }
  0xef   : > { %v1115_v14 = vpack.c.bf16 %v516_v4, %v516_v4  ;;  %724 = vst.msk [vmem:[%s1315_s6 + $0x30] sm:$0xf] %vm711_vm1, %v1112_v8  ;;  %v508_v21 = vadd.f32 %v1307_v17, %v507_v11  ;;  %v870_v27 = vsel %vm373_vm0, %v827_v10, 0.0  ;;  %v830_v60 = vmul.f32 %v516_v4, %v516_v4 }
  0xf0   : > { %v768_v22 = vadd.f32 %v767_v20, %v766_v13  ;;  %v869_v23 = vadd.f32 %v868_v18, %v867_v12  ;;  %v773_v43 = vsel %vm373_vm0, %v516_v4, 0.0  ;;  %v1457_v46 = vadd.f32 %v1375_v25, %v1307_v17 }
  0xf1   : > { %727 = vst.msk [vmem:[%s1315_s6 + $0x3c] sm:$0xf] %vm711_vm1, %v1115_v14  ;;  %v1113_v28 = vpack.c.bf16 %v508_v21, %v508_v21  ;;  %v769_v29 = vsel %vm373_vm0, %v508_v21, 0.0  ;;  %v828_v30 = vmul.f32 %v508_v21, %v508_v21  ;;  %v540_v47 = vadd.f32 %v1307_v17, %v1384_v34  ;;  %v571_v21 = vpop.f32.mrf.mxu1 }
  0xf2   : > { %v871_v31 = vadd.f32 %v870_v27, %v869_v23  ;;  %v770_v32 = vadd.f32 %v769_v29, %v768_v22  ;;  %v775_v49 = vsel %vm373_vm0, %v1363_v9, 0.0  ;;  %v1465_v53 = vadd.f32 %v1391_v44, %v1307_v17 }
  0xf3   : > { %725 = vst.msk [vmem:[%s1315_s6 + $0x34] sm:$0xf] %vm711_vm1, %v1113_v28  ;;  %v872_v5 = vsel %vm373_vm0, %v828_v30, 0.0  ;;  %v876_v15 = vsel %vm373_vm0, %v830_v60, 0.0  ;;  %v832_v56 = vmul.f32 %v524_v24, %v524_v24  ;;  %v1120_v25 = vpack.c.bf16 %v537_v45, %v537_v45 }
  0xf4   : > { %v772_v40 = vadd.f32 %v771_v36, %v770_v32  ;;  %v873_v42 = vadd.f32 %v872_v5, %v871_v31  ;;  %v1123_v57 = vpack.c.bf16 %v1457_v46, %v1457_v46  ;;  %v833_v9 = vmul.f32 %v1331_v41, %v1331_v41 }
  0xf5   : > { %v878_v59 = vsel %vm373_vm0, %v831_v39, 0.0  ;;  %v777_v61 = vsel %vm373_vm0, %v524_v24, 0.0  ;;  %732 = vst.msk [vmem:[%s1315_s6 + $0x50] sm:$0xf] %vm711_vm1, %v1120_v25  ;;  %v1121_v44 = vpack.c.bf16 %v540_v47, %v540_v47  ;;  %v834_v52 = vmul.f32 %v1398_v48, %v1398_v48 }
  0xf6   : > { %v875_v50 = vadd.f32 %v874_v38, %v873_v42  ;;  %v774_v51 = vadd.f32 %v773_v43, %v772_v40  ;;  %735 = vst.msk [vmem:[%s1315_s6 + $0x5c] sm:$0xf] %vm711_vm1, %v1123_v57  ;;  %v1126_v0 = vpack.c.bf16 %v1465_v53, %v1465_v53  ;;  %v779_v3 = vsel %vm373_vm0, %v1331_v41, 0.0 }
  0xf7   : > { %v880_v4 = vsel %vm373_vm0, %v832_v56, 0.0  ;;  %v835_v6 = vmul.f32 %v537_v45, %v537_v45  ;;  %733 = vst.msk [vmem:[%s1315_s6 + $0x54] sm:$0xf] %vm711_vm1, %v1121_v44  ;;  %v553_v7 = vadd.f32 %v1307_v17, %v1402_v55  ;;  %v564_v11 = vadd.f32 %v1411_v1, %v1307_v17 }
  0xf8   : > { %v776_v58 = vadd.f32 %v775_v49, %v774_v51  ;;  %v877_v34 = vadd.f32 %v876_v15, %v875_v50  ;;  %738 = vst.msk [vmem:[%s1315_s6 + $0x68] sm:$0xf] %vm711_vm1, %v1126_v0  ;;  %v556_v12 = vadd.f32 %v1307_v17, %v1420_v16  ;;  %v882_v41 = vsel %vm373_vm0, %v833_v9, 0.0 }
  0xf9   : > { %v781_v13 = vsel %vm373_vm0, %v1398_v48, 0.0  ;;  %v1124_v14 = vpack.c.bf16 %v553_v7, %v553_v7  ;;  %v884_v55 = vsel %vm373_vm0, %v834_v52, 0.0  ;;  %v1127_v20 = vpack.c.bf16 %v564_v11, %v564_v11 }
  0xfa   : > { %v778_v62 = vadd.f32 %v777_v61, %v776_v58  ;;  %v879_v63 = vadd.f32 %v878_v59, %v877_v34  ;;  %v837_v1 = vmul.f32 %v1433_v26, %v1433_v26  ;;  %v783_v22 = vsel %vm373_vm0, %v537_v45, 0.0 }
  0xfb   : > { %v836_v16 = vmul.f32 %v540_v47, %v540_v47  ;;  %736 = vst.msk [vmem:[%s1315_s6 + $0x60] sm:$0xf] %vm711_vm1, %v1124_v14  ;;  %v1125_v23 = vpack.c.bf16 %v556_v12, %v556_v12  ;;  %v886_v48 = vsel %vm373_vm0, %v835_v6, 0.0  ;;  %739 = vst.msk [vmem:[%s1315_s6 + $0x6c] sm:$0xf] %vm711_vm1, %v1127_v20  ;;  %v577_v28 = vadd.f32 %v1437_v35, %v1307_v17 }
  0xfc   : > { %v780_v8 = vadd.f32 %v779_v3, %v778_v62  ;;  %v881_v10 = vadd.f32 %v880_v4, %v879_v63  ;;  %v785_v29 = vsel %vm373_vm0, %v540_v47, 0.0  ;;  %v569_v30 = vadd.f32 %v1307_v17, %v568_v54 }
  0xfd   : > { %737 = vst.msk [vmem:[%s1315_s6 + $0x64] sm:$0xf] %vm711_vm1, %v1125_v23  ;;  %v580_v31 = vadd.f32 %v1182_v2, %v1307_v17  ;;  %v572_v32 = vadd.f32 %v1307_v17, %v571_v21  ;;  %v1130_v60 = vpack.c.bf16 %v577_v28, %v577_v28  ;;  %v787_v5 = vsel %vm373_vm0, %v1433_v26, 0.0 }
  0xfe   : > { %v883_v18 = vadd.f32 %v882_v41, %v881_v10  ;;  %v782_v19 = vadd.f32 %v781_v13, %v780_v8  ;;  %v838_v35 = vmul.f32 %v1457_v46, %v1457_v46  ;;  %v888_v37 = vsel %vm373_vm0, %v836_v16, 0.0 }
  0xff   : > { %v1128_v38 = vpack.c.bf16 %v569_v30, %v569_v30  ;;  %742 = vst.msk [vmem:[%s1315_s6 + $0x78] sm:$0xf] %vm711_vm1, %v1130_v60  ;;  %v1131_v42 = vpack.c.bf16 %v580_v31, %v580_v31  ;;  %v890_v17 = vsel %vm373_vm0, %v837_v1, 0.0  ;;  %v789_v43 = vsel %vm373_vm0, %v1457_v46, 0.0 }
 0x100   : > { %v784_v24 = vadd.f32 %v783_v22, %v782_v19  ;;  %v885_v27 = vadd.f32 %v884_v55, %v883_v18  ;;  %v839_v45 = vmul.f32 %v553_v7, %v553_v7  ;;  %v1129_v26 = vpack.c.bf16 %v572_v32, %v572_v32 }
 0x101   : > { %740 = vst.msk [vmem:[%s1315_s6 + $0x70] sm:$0xf] %vm711_vm1, %v1128_v38  ;;  %743 = vst.msk [vmem:[%s1315_s6 + $0x7c] sm:$0xf] %vm711_vm1, %v1131_v42  ;;  %v892_v50 = vsel %vm373_vm0, %v838_v35, 0.0  ;;  %v791_v51 = vsel %vm373_vm0, %v553_v7, 0.0  ;;  %v840_v54 = vmul.f32 %v556_v12, %v556_v12  ;;  %v841_v46 = vmul.f32 %v1465_v53, %v1465_v53 }
 0x102   : > { %v887_v33 = vadd.f32 %v886_v48, %v885_v27  ;;  %v786_v36 = vadd.f32 %v785_v29, %v784_v24  ;;  %741 = vst.msk [vmem:[%s1315_s6 + $0x74] sm:$0xf] %vm711_vm1, %v1129_v26  ;;  %v894_v25 = vsel %vm373_vm0, %v839_v45, 0.0  ;;  %v793_v57 = vsel %vm373_vm0, %v556_v12, 0.0 }
 0x103   : > { %v795_v9 = vsel %vm373_vm0, %v1465_v53, 0.0  ;;  %v842_v59 = vmul.f32 %v564_v11, %v564_v11  ;;  %v896_v61 = vsel %vm373_vm0, %v840_v54, 0.0  ;;  %v898_v62 = vsel %vm373_vm0, %v841_v46, 0.0 }
 0x104   : > { %v788_v39 = vadd.f32 %v787_v5, %v786_v36  ;;  %v889_v40 = vadd.f32 %v888_v37, %v887_v33  ;;  %v797_v63 = vsel %vm373_vm0, %v564_v11, 0.0  ;;  %v843_v0 = vmul.f32 %v569_v30, %v569_v30 }
 0x105   : > { %v900_v4 = vsel %vm373_vm0, %v842_v59, 0.0  ;;  %v799_v6 = vsel %vm373_vm0, %v569_v30, 0.0  ;;  %v844_v7 = vmul.f32 %v572_v32, %v572_v32  ;;  %v845_v53 = vmul.f32 %v577_v28, %v577_v28 }
 0x106   : > { %v891_v47 = vadd.f32 %v890_v17, %v889_v40  ;;  %v790_v49 = vadd.f32 %v789_v43, %v788_v39  ;;  %v902_v12 = vsel %vm373_vm0, %v843_v0, 0.0  ;;  %v801_v41 = vsel %vm373_vm0, %v572_v32, 0.0 }
 0x107   : > { %v803_v11 = vsel %vm373_vm0, %v577_v28, 0.0  ;;  %v846_v55 = vmul.f32 %v580_v31, %v580_v31  ;;  %v904_v18 = vsel %vm373_vm0, %v844_v7, 0.0  ;;  %v906_v21 = vsel %vm373_vm0, %v845_v53, 0.0 }
 0x108   : > { %v792_v15 = vadd.f32 %v791_v51, %v790_v49  ;;  %v893_v56 = vadd.f32 %v892_v50, %v891_v47  ;;  %v805_v1 = vsel %vm373_vm0, %v580_v31, 0.0 }
 0x109   : > { %v908_v23 = vsel %vm373_vm0, %v846_v55, 0.0 }
 0x10a   : > { %v895_v58 = vadd.f32 %v894_v25, %v893_v56  ;;  %v794_v34 = vadd.f32 %v793_v57, %v792_v15 }
 0x10c   : > { %v796_v44 = vadd.f32 %v795_v9, %v794_v34  ;;  %v897_v52 = vadd.f32 %v896_v61, %v895_v58 }
 0x10e   : > { %v899_v2 = vadd.f32 %v898_v62, %v897_v52  ;;  %v798_v3 = vadd.f32 %v797_v63, %v796_v44 }
 0x110   : > { %v800_v8 = vadd.f32 %v799_v6, %v798_v3  ;;  %v901_v10 = vadd.f32 %v900_v4, %v899_v2 }
 0x112   : > { %v903_v13 = vadd.f32 %v902_v12, %v901_v10  ;;  %v802_v14 = vadd.f32 %v801_v41, %v800_v8 }
 0x114   : > { %v804_v19 = vadd.f32 %v803_v11, %v802_v14  ;;  %v905_v20 = vadd.f32 %v904_v18, %v903_v13 }
 0x116   : > { %v806_v22 = vadd.f32 %v805_v1, %v804_v19  ;;  %v907_v16 = vadd.f32 %v906_v21, %v905_v20 }
 0x118   : > { %v807_v24 = vrot.slane %v806_v22, 4  ;;  %v909_v27 = vadd.f32 %v908_v23, %v907_v16 }
 0x11a   : > { %v808_v48 = vadd.f32 %v807_v24, %v806_v22  ;;  %v910_v29 = vrot.slane %v909_v27, 4 }
 0x11c   : > { %v809_v28 = vrot.slane %v808_v48, 2  ;;  %v911_v30 = vadd.f32 %v910_v29, %v909_v27 }
 0x11e   : > { %v810_v32 = vadd.f32 %v809_v28, %v808_v48  ;;  %v912_v33 = vrot.slane %v911_v30, 2 }
 0x120   : > { %v811_v36 = vrot.slane %v810_v32, 1  ;;  %v913_v60 = vadd.f32 %v912_v33, %v911_v30 }
 0x122   : > { %v812_v31 = vadd.f32 %v811_v36, %v810_v32  ;;  %v914_v5 = vrot.slane %v913_v60, 1 }
 0x124   : > { %814 = vst.msk [vmem:[%s241_s9] sm:$0x1] %vm813_vm2, %v812_v31  ;;  %v915_v35 = vadd.f32 %v914_v5, %v913_v60 }
 0x126   : > { %916 = vst.msk [vmem:[%s244_s12] sm:$0x1] %vm813_vm2, %v915_v35 }
 0x127 PF: > { %s16_s18 = sadd.s32 1, %s1216_s18  }
 0x128   : > { %p13_p5 = scmp.ge.s32.totalorder %s16_s18, 4  }
 0x12a   :  { %15 = sbr.rel (!%p13_p5) target bundleno = 1 (0x1), region = 86 }

// kernel: res_bottleneck_block.8
= control target key start
LH: loop header
LB: loop body
LE: loop exit
PB: predicated region body
PF: predicated region fallthrough
CT: control target
= control target key end

     0   :  { %s361_s12 = smov 0   ;;  %s384_s0 = inlined_call_operand.vmem [shape: bf16[64,128], index: 0, kind: input, shape index: {}]   ;;  %s385_s1 = inlined_call_operand.vmem [shape: f32[1,128], index: 1, kind: input, shape index: {}]   ;;  %s386_s2 = inlined_call_operand.vmem [shape: f32[1,128], index: 2, kind: input, shape index: {}]   ;;  %s387_s3 = inlined_call_operand.vmem [shape: bf16[64,128], index: 3, kind: output, shape index: {}]  }
   0x1 LB: > { %s284_s13 = sadd.s32 4294967295, %s339_s12   ;;  %p288_p0 = scmp.ge.s32.totalorder %s339_s12, 1  ;;  %s339_s12 = sphi %s361_s12, %s13_s12  }
   0x2   : > { %p138_p1 = scmp.lt.s32.totalorder %s339_s12, 3 }
   0x4   : > { %p139_p2 = pnand %p288_p0, %p138_p1 }
   0x5   : > { %s289_s14 = sshll.u32 (!%p139_p2), %s284_s13, 2 }
   0x6   : > { %142 = sbr.rel (%p139_p2) target bundleno = 26 (0x1a), region = 32  ;;  %p163_p3 = scmp.lt.s32.totalorder (!%p139_p2), %s289_s14, 7 }
   0xb   : > { %s389_s14 = smov (!%p163_p3, %s289_s14), 7  ;;  %v293_v2 = vld [vmem:[%s385_s1] ss:$0 sm:$0xff] }
   0xc   : > { %s290_s15 = sshll.u32 %s389_s14, 2  ;;  %v294_v7 = vld [vmem:[%s386_s2] ss:$0 sm:$0xff] }
   0xd   : > { %s166_s18 = scalar_lea.vmem %s384_s0, %s290_s15  ;;  %s172_s25 = scalar_lea.vmem %s387_s3, %s290_s15 }
   0xe   : > { %v306_v0 = vld [vmem:[%s166_s18] sm:$0xff]   ;;  %v323_v1 = vld [vmem:[%s166_s18 + $0x8] sm:$0xff]  }
   0xf   : > { %v307_v3 = vunpack.c.l.bf16 %v306_v0  ;;  %v308_v4 = vunpack.c.h.bf16 %v306_v0  ;;  %v311_v5 = vunpack.c.l.bf16 %v323_v1  ;;  %v312_v6 = vunpack.c.h.bf16 %v323_v1 }
  0x11   : > { %v189_v8 = vmul.f32 %v307_v3, %v293_v2  ;;  %v190_v9 = vmul.f32 %v308_v4, %v293_v2  ;;  %v191_v10 = vmul.f32 %v311_v5, %v293_v2  ;;  %v192_v11 = vmul.f32 %v312_v6, %v293_v2 }
  0x13   : > { %v200_v12 = vadd.f32 %v294_v7, %v189_v8  ;;  %v201_v13 = vadd.f32 %v294_v7, %v190_v9  ;;  %v202_v14 = vadd.f32 %v294_v7, %v191_v10  ;;  %v203_v15 = vadd.f32 %v294_v7, %v192_v11 }
  0x15   : > { %v204_v16 = vmax.f32 %v200_v12, 0.0  ;;  %v205_v17 = vmax.f32 %v201_v13, 0.0  ;;  %v206_v18 = vmax.f32 %v202_v14, 0.0  ;;  %v207_v19 = vmax.f32 %v203_v15, 0.0 }
  0x17   : > { %v316_v20 = vpack.c.bf16 %v205_v17, %v204_v16  ;;  %v321_v21 = vpack.c.bf16 %v207_v19, %v206_v18 }
  0x19   : > { %317 = vst [vmem:[%s172_s25] sm:$0xff] %v316_v20   ;;  %324 = vst [vmem:[%s172_s25 + $0x8] sm:$0xff] %v321_v21  }
  0x1a PF: > { %s13_s12 = sadd.s32 1, %s339_s12  }
  0x1b   : > { %p10_p4 = scmp.ge.s32.totalorder %s13_s12, 4  }
  0x1d   :  { %12 = sbr.rel (!%p10_p4) target bundleno = 1 (0x1), region = 62 }

// kernel: res_bottleneck_block.7
= control target key start
LH: loop header
LB: loop body
LE: loop exit
PB: predicated region body
PF: predicated region fallthrough
CT: control target
= control target key end

     0   :  { %s624_s18 = smov 0   ;;  %s692_s0 = inlined_call_operand.vmem [shape: bf16[128,16], index: 0, kind: input, shape index: {}]   ;;  %s693_s1 = inlined_call_operand.vmem [shape: bf16[16,64], index: 1, kind: input, shape index: {}]   ;;  %s694_s2 = inlined_call_operand.vmem [shape: f32[1,64], index: 2, kind: input, shape index: {}]   ;;  %s695_s3 = inlined_call_operand.vmem [shape: f32[128,64], index: 3, kind: output, shape index: {0}]   ;;  %s696_s4 = inlined_call_operand.vmem [shape: f32[2,1,64], index: 4, kind: output, shape index: {1}]   ;;  %s697_s5 = inlined_call_operand.vmem [shape: f32[2,1,64], index: 5, kind: output, shape index: {2}]  }
   0x1 LB: > { %s630_s19 = sadd.s32 4294967295, %s592_s18   ;;  %p539_p0 = scmp.ge.s32.totalorder %s592_s18, 1  ;;  %s592_s18 = sphi %s624_s18, %s16_s18  }
   0x2   : > { %p193_p1 = scmp.lt.s32.totalorder %s592_s18, 3 }
   0x4   : > { %p194_p2 = pnand %p539_p0, %p193_p1 }
   0x5   : > { %s540_s22 = sshll.u32 (!%p194_p2), %s630_s19, 3  ;;  %p239_p4 = scmp.lt.s32.totalorder (!%p194_p2), %s630_s19, 1 }
   0x6   : > { %197 = sbr.rel (%p194_p2) target bundleno = 247 (0xf7), region = 32  ;;  %p228_p3 = scmp.lt.s32.totalorder (!%p194_p2), %s540_s22, 15 }
   0xb   : > { %v581_v0 = vld [vmem:[%s693_s1] sm:$0xff]   ;;  %s699_s22 = smov (!%p228_p3, %s540_s22), 15  ;;  %vm289_vm0 = vcmask 130048   ;;  %vm367_vm1 = vcmask 523264   ;;  %s701_s19 = smov (!%p239_p4, %s630_s19), 1  ;;  %vm397_vm2 = vcmask 516096  }
   0xc   : > { %561 = vmatprep.subr.bf16.mxu0 %v581_v0  ;;  %571 = vmatprep.subr.bf16.mxu1 %v581_v0  ;;  %s541_s23 = sshll.u32 %s699_s22, 2  ;;  %s543_s27 = sshll.u32 %s699_s22, 3  ;;  %v544_v5 = vld [vmem:[%s694_s2] ss:$0 sm:$0xff] }
   0xd   : > { %562 = vmatpush3.bf16.msra.mxu0 %v581_v0  ;;  %572 = vmatpush3.bf16.msra.mxu1 %v581_v0  ;;  %s231_s26 = scalar_lea.vmem %s692_s0, %s541_s23  ;;  %s647_s7 = scalar_lea.vmem %s695_s3, %s543_s27 }
   0xe   : > { %v582_v1 = vld [vmem:[%s231_s26] sm:$0xff]   ;;  %v583_v2 = vld [vmem:[%s231_s26 + $0x8] sm:$0xff]   ;;  %v584_v3 = vld [vmem:[%s231_s26 + $0x10] sm:$0xff]   ;;  %s241_s10 = scalar_lea.vmem %s696_s4, %s701_s19  ;;  %s244_s13 = scalar_lea.vmem %s697_s5, %s701_s19 }
   0xf   : > { %563 = vmatprep.mubr.msk.bf16.mxu0 %vm289_vm0, %v582_v1  ;;  %v585_v4 = vld [vmem:[%s231_s26 + $0x18] sm:$0xff]   ;;  %567 = vmatprep.mubr.msk.bf16.mxu1 %vm289_vm0, %v584_v3 }
  0x10   : > { %564 = vmatmul.mubr.msk.bf16.vlgmr.msra.gmra.mxu0 %vm289_vm0, %v583_v2  ;;  %568 = vmatmul.mubr.msk.bf16.vlgmr.msra.gmra.mxu1 %vm289_vm0, %v585_v4 }
  0xd0   : > { %v565_v6 = vpop.f32.mrf.mxu0  ;;  %v569_v9 = vpop.f32.mrf.mxu1 }
  0xd1   : > { %v345_v7 = vadd.f32 %v565_v6, %v544_v5  ;;  %v361_v11 = vadd.f32 %v569_v9, %v544_v5 }
  0xd2   : > { %v336_v8 = vpop.f32.mrf.mxu0  ;;  %v352_v13 = vpop.f32.mrf.mxu1 }
  0xd3   : > { %370 = vst.msk [vmem:[%s647_s7 + $0x10] sm:$0xff] %vm367_vm1, %v345_v7  ;;  %v337_v10 = vadd.f32 %v544_v5, %v336_v8  ;;  %374 = vst.msk [vmem:[%s647_s7 + $0x30] sm:$0xff] %vm367_vm1, %v361_v11  ;;  %v353_v15 = vadd.f32 %v544_v5, %v352_v13  ;;  %v401_v22 = vmul.f32 %v345_v7, %v345_v7  ;;  %v379_v28 = vsel %vm367_vm1, %v345_v7, 0.0 }
  0xd4   : > { %v566_v12 = vpop.f32.mrf.mxu0  ;;  %v570_v17 = vpop.f32.mrf.mxu1  ;;  %v405_v44 = vmul.f32 %v361_v11, %v361_v11  ;;  %v387_v49 = vsel %vm367_vm1, %v361_v11, 0.0 }
  0xd5   : > { %368 = vst.msk [vmem:[%s647_s7] sm:$0xff] %vm367_vm1, %v337_v10  ;;  %v348_v14 = vadd.f32 %v566_v12, %v544_v5  ;;  %v399_v18 = vmul.f32 %v337_v10, %v337_v10  ;;  %v364_v20 = vadd.f32 %v570_v17, %v544_v5  ;;  %372 = vst.msk [vmem:[%s647_s7 + $0x20] sm:$0xff] %vm367_vm1, %v353_v15  ;;  %v376_v23 = vsel %vm367_vm1, %v337_v10, 0.0 }
  0xd6   : > { %v339_v16 = vpop.f32.mrf.mxu0  ;;  %v355_v21 = vpop.f32.mrf.mxu1  ;;  %v410_v34 = vsel %vm367_vm1, %v401_v22, 0.0  ;;  %v403_v36 = vmul.f32 %v353_v15, %v353_v15  ;;  %v383_v40 = vsel %vm367_vm1, %v353_v15, 0.0  ;;  %v418_v54 = vsel %vm367_vm1, %v405_v44, 0.0 }
  0xd7   : > { %v340_v19 = vadd.f32 %v544_v5, %v339_v16  ;;  %371 = vst.msk [vmem:[%s647_s7 + $0x18] sm:$0xff] %vm367_vm1, %v348_v14  ;;  %375 = vst.msk [vmem:[%s647_s7 + $0x38] sm:$0xff] %vm367_vm1, %v364_v20  ;;  %v356_v27 = vadd.f32 %v544_v5, %v355_v21  ;;  %v407_v29 = vsel %vm367_vm1, %v399_v18, 0.0  ;;  %v402_v30 = vmul.f32 %v348_v14, %v348_v14 }
  0xd8   : > { %v381_v35 = vsel %vm367_vm1, %v348_v14, 0.0  ;;  %v414_v45 = vsel %vm367_vm1, %v403_v36, 0.0  ;;  %v406_v50 = vmul.f32 %v364_v20, %v364_v20  ;;  %v389_v55 = vsel %vm367_vm1, %v364_v20, 0.0 }
  0xd9   : > { %369 = vst.msk [vmem:[%s647_s7 + $0x8] sm:$0xff] %vm367_vm1, %v340_v19  ;;  %v377_v24 = vsel %vm367_vm1, %v340_v19, 0.0  ;;  %v400_v25 = vmul.f32 %v340_v19, %v340_v19  ;;  %373 = vst.msk [vmem:[%s647_s7 + $0x28] sm:$0xff] %vm367_vm1, %v356_v27  ;;  %v412_v39 = vsel %vm367_vm1, %v402_v30, 0.0  ;;  %v404_v41 = vmul.f32 %v356_v27, %v356_v27 }
  0xda   : > { %v378_v26 = vadd.f32 %v377_v24, %v376_v23  ;;  %v385_v46 = vsel %vm367_vm1, %v356_v27, 0.0  ;;  %v420_v58 = vsel %vm367_vm1, %v406_v50, 0.0 }
  0xdb   : > { %v408_v31 = vsel %vm367_vm1, %v400_v25, 0.0  ;;  %v416_v51 = vsel %vm367_vm1, %v404_v41, 0.0 }
  0xdc   : > { %v380_v32 = vadd.f32 %v379_v28, %v378_v26  ;;  %v409_v33 = vadd.f32 %v408_v31, %v407_v29 }
  0xde   : > { %v411_v37 = vadd.f32 %v410_v34, %v409_v33  ;;  %v382_v38 = vadd.f32 %v381_v35, %v380_v32 }
  0xe0   : > { %v384_v42 = vadd.f32 %v383_v40, %v382_v38  ;;  %v413_v43 = vadd.f32 %v412_v39, %v411_v37 }
  0xe2   : > { %v386_v47 = vadd.f32 %v385_v46, %v384_v42  ;;  %v415_v48 = vadd.f32 %v414_v45, %v413_v43 }
  0xe4   : > { %v388_v52 = vadd.f32 %v387_v49, %v386_v47  ;;  %v417_v53 = vadd.f32 %v416_v51, %v415_v48 }
  0xe6   : > { %v390_v56 = vadd.f32 %v389_v55, %v388_v52  ;;  %v419_v57 = vadd.f32 %v418_v54, %v417_v53 }
  0xe8   : > { %v391_v59 = vrot.slane %v390_v56, 4  ;;  %v421_v60 = vadd.f32 %v420_v58, %v419_v57 }
  0xea   : > { %v392_v61 = vadd.f32 %v391_v59, %v390_v56  ;;  %v422_v62 = vrot.slane %v421_v60, 4 }
  0xec   : > { %v393_v63 = vrot.slane %v392_v61, 2  ;;  %v423_v0 = vadd.f32 %v422_v62, %v421_v60 }
  0xee   : > { %v394_v1 = vadd.f32 %v393_v63, %v392_v61  ;;  %v424_v2 = vrot.slane %v423_v0, 2 }
  0xf0   : > { %v395_v3 = vrot.slane %v394_v1, 1  ;;  %v425_v4 = vadd.f32 %v424_v2, %v423_v0 }
  0xf2   : > { %v396_v5 = vadd.f32 %v395_v3, %v394_v1  ;;  %v426_v6 = vrot.slane %v425_v4, 1 }
  0xf4   : > { %398 = vst.msk [vmem:[%s241_s10] sm:$0x1] %vm397_vm2, %v396_v5  ;;  %v427_v7 = vadd.f32 %v426_v6, %v425_v4 }
  0xf6   : > { %428 = vst.msk [vmem:[%s244_s13] sm:$0x1] %vm397_vm2, %v427_v7 }
  0xf7 PF: > { %s16_s18 = sadd.s32 1, %s592_s18  }
  0xf8   : > { %p13_p5 = scmp.ge.s32.totalorder %s16_s18, 4  }
  0xfa   :  { %15 = sbr.rel (!%p13_p5) target bundleno = 1 (0x1), region = 86 }

// kernel: res_bottleneck_block.11
= control target key start
LH: loop header
LB: loop body
LE: loop exit
PB: predicated region body
PF: predicated region fallthrough
CT: control target
= control target key end

     0   :  { %s481_s21 = smov 0   ;;  %s518_s0 = inlined_call_operand.vmem [shape: f32[64,128], index: 0, kind: input, shape index: {}]   ;;  %s519_s1 = inlined_call_operand.vmem [shape: f32[64,128], index: 1, kind: input, shape index: {}]   ;;  %s520_s2 = inlined_call_operand.vmem [shape: f32[1,128], index: 2, kind: input, shape index: {}]   ;;  %s521_s3 = inlined_call_operand.vmem [shape: f32[1,128], index: 3, kind: input, shape index: {}]   ;;  %s522_s4 = inlined_call_operand.vmem [shape: f32[1,128], index: 4, kind: input, shape index: {}]   ;;  %s523_s5 = inlined_call_operand.vmem [shape: f32[1,128], index: 5, kind: input, shape index: {}]   ;;  %s524_s6 = inlined_call_operand.vmem [shape: f32[64,128], index: 6, kind: output, shape index: {}]  }
   0x1 LB: > { %s413_s22 = sadd.s32 4294967295, %s444_s21   ;;  %p417_p0 = scmp.ge.s32.totalorder %s444_s21, 1  ;;  %s444_s21 = sphi %s481_s21, %s16_s21  }
   0x2   : > { %p224_p1 = scmp.lt.s32.totalorder %s444_s21, 3 }
   0x4   : > { %p225_p2 = pnand %p417_p0, %p224_p1 }
   0x5   : > { %s418_s23 = sshll.u32 (!%p225_p2), %s413_s22, 2 }
   0x6   : > { %228 = sbr.rel (%p225_p2) target bundleno = 28 (0x1c), region = 44  ;;  %p260_p3 = scmp.lt.s32.totalorder (!%p225_p2), %s418_s23, 7 }
   0xb   : > { %s526_s23 = smov (!%p260_p3, %s418_s23), 7  ;;  %v424_v0 = vld [vmem:[%s520_s2] ss:$0 sm:$0xff] }
   0xc   : > { %s489_s24 = sshll.u32 %s526_s23, 3  ;;  %v426_v1 = vld [vmem:[%s522_s4] ss:$0 sm:$0xff] }
   0xd   : > { %s263_s7 = scalar_lea.vmem %s518_s0, %s489_s24  ;;  %s269_s10 = scalar_lea.vmem %s519_s1, %s489_s24  ;;  %v425_v2 = vld [vmem:[%s521_s3] ss:$0 sm:$0xff] }
   0xe   : > { %v427_v3 = vld [vmem:[%s523_s5] ss:$0 sm:$0xff]  ;;  %v278_v6 = vld [vmem:[%s263_s7 + $0x8] sm:$0xff]  ;;  %v279_v11 = vld [vmem:[%s263_s7 + $0x10] sm:$0xff]  ;;  %s275_s17 = scalar_lea.vmem %s524_s6, %s489_s24 }
   0xf   : > { %v277_v4 = vld [vmem:[%s263_s7] sm:$0xff]  ;;  %v289_v9 = vmul.f32 %v424_v0, %v278_v6  ;;  %v308_v10 = vld [vmem:[%s269_s10 + $0x8] sm:$0xff]  ;;  %v309_v12 = vld [vmem:[%s269_s10 + $0x10] sm:$0xff]  ;;  %v290_v14 = vmul.f32 %v424_v0, %v279_v11 }
  0x10   : > { %v307_v5 = vld [vmem:[%s269_s10] sm:$0xff]  ;;  %v288_v7 = vmul.f32 %v424_v0, %v277_v4  ;;  %v319_v13 = vmul.f32 %v426_v1, %v308_v10  ;;  %v320_v15 = vmul.f32 %v426_v1, %v309_v12  ;;  %v280_v16 = vld [vmem:[%s263_s7 + $0x18] sm:$0xff] }
  0x11   : > { %v318_v8 = vmul.f32 %v426_v1, %v307_v5  ;;  %v310_v17 = vld [vmem:[%s269_s10 + $0x18] sm:$0xff]  ;;  %v300_v20 = vadd.f32 %v425_v2, %v289_v9  ;;  %v291_v21 = vmul.f32 %v424_v0, %v280_v16  ;;  %v301_v23 = vadd.f32 %v425_v2, %v290_v14 }
  0x12   : > { %v299_v18 = vadd.f32 %v425_v2, %v288_v7  ;;  %v330_v22 = vadd.f32 %v427_v3, %v319_v13  ;;  %v331_v24 = vadd.f32 %v427_v3, %v320_v15  ;;  %v321_v25 = vmul.f32 %v426_v1, %v310_v17 }
  0x13   : > { %v329_v19 = vadd.f32 %v427_v3, %v318_v8  ;;  %v304_v27 = vmax.f32 %v300_v20, 0.0  ;;  %v302_v28 = vadd.f32 %v425_v2, %v291_v21  ;;  %v305_v29 = vmax.f32 %v301_v23, 0.0 }
  0x14   : > { %v303_v26 = vmax.f32 %v299_v18, 0.0  ;;  %v332_v30 = vadd.f32 %v427_v3, %v321_v25 }
  0x15   : > { %v334_v32 = vadd.f32 %v330_v22, %v304_v27  ;;  %v306_v33 = vmax.f32 %v302_v28, 0.0  ;;  %v335_v34 = vadd.f32 %v331_v24, %v305_v29 }
  0x16   : > { %v333_v31 = vadd.f32 %v329_v19, %v303_v26 }
  0x17   : > { %v338_v36 = vmax.f32 %v334_v32, 0.0  ;;  %v336_v37 = vadd.f32 %v332_v30, %v306_v33  ;;  %v339_v38 = vmax.f32 %v335_v34, 0.0 }
  0x18   : > { %v337_v35 = vmax.f32 %v333_v31, 0.0 }
  0x19   : > { %v340_v39 = vmax.f32 %v336_v37, 0.0  ;;  %342 = vst [vmem:[%s275_s17 + $0x8] sm:$0xff] %v338_v36  ;;  %343 = vst [vmem:[%s275_s17 + $0x10] sm:$0xff] %v339_v38 }
  0x1a   : > { %341 = vst [vmem:[%s275_s17] sm:$0xff] %v337_v35 }
  0x1b   : > { %344 = vst [vmem:[%s275_s17 + $0x18] sm:$0xff] %v340_v39 }
  0x1c PF: > { %s16_s21 = sadd.s32 1, %s444_s21  }
  0x1d   : > { %p13_p4 = scmp.ge.s32.totalorder %s16_s21, 4  }
  0x1f   :  { %15 = sbr.rel (!%p13_p4) target bundleno = 1 (0x1), region = 77 }

// kernel: res_bottleneck_block.10
= control target key start
LH: loop header
LB: loop body
LE: loop exit
PB: predicated region body
PF: predicated region fallthrough
CT: control target
= control target key end

     0   :  { %s731_s24 = smov 0   ;;  %s813_s0 = inlined_call_operand.vmem [shape: bf16[128,16], index: 0, kind: input, shape index: {}]   ;;  %s814_s1 = inlined_call_operand.vmem [shape: bf16[16,64], index: 1, kind: input, shape index: {}]   ;;  %s815_s2 = inlined_call_operand.vmem [shape: f32[1,64], index: 2, kind: input, shape index: {}]   ;;  %s816_s3 = inlined_call_operand.vmem [shape: f32[1,16], index: 3, kind: input, shape index: {}]   ;;  %s817_s4 = inlined_call_operand.vmem [shape: f32[1,16], index: 4, kind: input, shape index: {}]   ;;  %s818_s5 = inlined_call_operand.vmem [shape: f32[128,64], index: 5, kind: output, shape index: {0}]   ;;  %s819_s6 = inlined_call_operand.vmem [shape: f32[2,1,64], index: 6, kind: output, shape index: {1}]   ;;  %s820_s7 = inlined_call_operand.vmem [shape: f32[2,1,64], index: 7, kind: output, shape index: {2}]  }
   0x1 LB: > { %s737_s25 = sadd.s32 4294967295, %s689_s24   ;;  %p623_p0 = scmp.ge.s32.totalorder %s689_s24, 1  ;;  %s689_s24 = sphi %s731_s24, %s18_s24  }
   0x2   : > { %p243_p1 = scmp.lt.s32.totalorder %s689_s24, 3 }
   0x4   : > { %p244_p2 = pnand %p623_p0, %p243_p1 }
   0x5   : > { %s624_s28 = sshll.u32 (!%p244_p2), %s737_s25, 3  ;;  %p293_p4 = scmp.lt.s32.totalorder (!%p244_p2), %s737_s25, 1 }
   0x6   : > { %247 = sbr.rel (%p244_p2) target bundleno = 257 (0x101), region = 40  ;;  %p282_p3 = scmp.lt.s32.totalorder (!%p244_p2), %s624_s28, 15 }
   0xb   : > { %v682_v0 = vld [vmem:[%s814_s1] sm:$0xff]   ;;  %s822_s28 = smov (!%p282_p3, %s624_s28), 15  ;;  %vm373_vm0 = vcmask 130048   ;;  %vm451_vm1 = vcmask 523264   ;;  %s824_s25 = smov (!%p293_p4, %s737_s25), 1  ;;  %vm481_vm2 = vcmask 516096  }
   0xc   : > { %662 = vmatprep.subr.bf16.mxu0 %v682_v0  ;;  %672 = vmatprep.subr.bf16.mxu1 %v682_v0  ;;  %s625_s29 = sshll.u32 %s822_s28, 2  ;;  %v628_v1 = vld [vmem:[%s816_s3] ss:$0 sm:$0xff]  ;;  %s627_s14 = sshll.u32 %s822_s28, 3 }
   0xd   : > { %663 = vmatpush3.bf16.msra.mxu0 %v682_v0  ;;  %673 = vmatpush3.bf16.msra.mxu1 %v682_v0  ;;  %s285_s9 = scalar_lea.vmem %s813_s0, %s625_s29  ;;  %v629_v10 = vld [vmem:[%s817_s4] ss:$0 sm:$0xff]  ;;  %s768_s19 = scalar_lea.vmem %s818_s5, %s627_s14 }
   0xe   : > { %v639_v2 = vld [vmem:[%s285_s9] sm:$0xff]   ;;  %v654_v3 = vld [vmem:[%s285_s9 + $0x8] sm:$0xff]   ;;  %v655_v4 = vld [vmem:[%s285_s9 + $0x10] sm:$0xff]   ;;  %s295_s22 = scalar_lea.vmem %s819_s6, %s824_s25  ;;  %s298_s27 = scalar_lea.vmem %s820_s7, %s824_s25 }
   0xf   : > { %v640_v5 = vunpack.c.l.bf16 %v639_v2  ;;  %v641_v6 = vunpack.c.h.bf16 %v639_v2  ;;  %v644_v7 = vunpack.c.l.bf16 %v654_v3  ;;  %v645_v8 = vunpack.c.h.bf16 %v654_v3  ;;  %v656_v9 = vld [vmem:[%s285_s9 + $0x18] sm:$0xff]   ;;  %v630_v43 = vld [vmem:[%s815_s2] ss:$0 sm:$0xff] }
  0x10   : > { %v648_v11 = vunpack.c.l.bf16 %v655_v4  ;;  %v649_v12 = vunpack.c.h.bf16 %v655_v4  ;;  %v652_v13 = vunpack.c.l.bf16 %v656_v9  ;;  %v653_v14 = vunpack.c.h.bf16 %v656_v9 }
  0x11   : > { %v323_v15 = vmul.f32 %v640_v5, %v628_v1  ;;  %v324_v16 = vmul.f32 %v641_v6, %v628_v1  ;;  %v325_v17 = vmul.f32 %v644_v7, %v628_v1  ;;  %v326_v18 = vmul.f32 %v645_v8, %v628_v1 }
  0x12   : > { %v327_v19 = vmul.f32 %v648_v11, %v628_v1  ;;  %v328_v20 = vmul.f32 %v649_v12, %v628_v1  ;;  %v329_v21 = vmul.f32 %v652_v13, %v628_v1  ;;  %v330_v22 = vmul.f32 %v653_v14, %v628_v1 }
  0x13   : > { %v338_v23 = vadd.f32 %v629_v10, %v323_v15  ;;  %v339_v24 = vadd.f32 %v629_v10, %v324_v16  ;;  %v340_v25 = vadd.f32 %v629_v10, %v325_v17  ;;  %v341_v26 = vadd.f32 %v629_v10, %v326_v18 }
  0x14   : > { %v342_v27 = vadd.f32 %v629_v10, %v327_v19  ;;  %v343_v28 = vadd.f32 %v629_v10, %v328_v20  ;;  %v344_v29 = vadd.f32 %v629_v10, %v329_v21  ;;  %v345_v30 = vadd.f32 %v629_v10, %v330_v22 }
  0x15   : > { %v346_v31 = vmax.f32 %v338_v23, 0.0  ;;  %v347_v32 = vmax.f32 %v339_v24, 0.0  ;;  %v348_v33 = vmax.f32 %v340_v25, 0.0  ;;  %v349_v34 = vmax.f32 %v341_v26, 0.0 }
  0x16   : > { %v350_v35 = vmax.f32 %v342_v27, 0.0  ;;  %v351_v36 = vmax.f32 %v343_v28, 0.0  ;;  %v352_v37 = vmax.f32 %v344_v29, 0.0  ;;  %v353_v38 = vmax.f32 %v345_v30, 0.0 }
  0x17   : > { %v354_v39 = vpack.c.bf16 %v347_v32, %v346_v31  ;;  %v355_v40 = vpack.c.bf16 %v349_v34, %v348_v33 }
  0x18   : > { %v356_v41 = vpack.c.bf16 %v351_v36, %v350_v35  ;;  %v357_v42 = vpack.c.bf16 %v353_v38, %v352_v37 }
  0x19   : > { %664 = vmatprep.mubr.msk.bf16.mxu0 %vm373_vm0, %v354_v39 }
  0x1a   : > { %665 = vmatmul.mubr.msk.bf16.vlgmr.msra.gmra.mxu0 %vm373_vm0, %v355_v40  ;;  %668 = vmatprep.mubr.msk.bf16.mxu1 %vm373_vm0, %v356_v41 }
  0x1b   : > { %669 = vmatmul.mubr.msk.bf16.vlgmr.msra.gmra.mxu1 %vm373_vm0, %v357_v42 }
  0xda   : > { %v666_v44 = vpop.f32.mrf.mxu0 }
  0xdb   : > { %v429_v45 = vadd.f32 %v666_v44, %v630_v43  ;;  %v670_v46 = vpop.f32.mrf.mxu1 }
  0xdc   : > { %v420_v47 = vpop.f32.mrf.mxu0  ;;  %v445_v48 = vadd.f32 %v670_v46, %v630_v43 }
  0xdd   : > { %454 = vst.msk [vmem:[%s768_s19 + $0x10] sm:$0xff] %vm451_vm1, %v429_v45  ;;  %v421_v49 = vadd.f32 %v630_v43, %v420_v47  ;;  %v436_v50 = vpop.f32.mrf.mxu1  ;;  %v485_v61 = vmul.f32 %v429_v45, %v429_v45  ;;  %v463_v2 = vsel %vm451_vm1, %v429_v45, 0.0 }
  0xde   : > { %458 = vst.msk [vmem:[%s768_s19 + $0x30] sm:$0xff] %vm451_vm1, %v445_v48  ;;  %v667_v51 = vpop.f32.mrf.mxu0  ;;  %v437_v52 = vadd.f32 %v630_v43, %v436_v50  ;;  %v489_v18 = vmul.f32 %v445_v48, %v445_v48  ;;  %v471_v23 = vsel %vm451_vm1, %v445_v48, 0.0 }
  0xdf   : > { %452 = vst.msk [vmem:[%s768_s19] sm:$0xff] %vm451_vm1, %v421_v49  ;;  %v432_v53 = vadd.f32 %v667_v51, %v630_v43  ;;  %v671_v54 = vpop.f32.mrf.mxu1  ;;  %v483_v57 = vmul.f32 %v421_v49, %v421_v49  ;;  %v460_v62 = vsel %vm451_vm1, %v421_v49, 0.0  ;;  %v494_v8 = vsel %vm451_vm1, %v485_v61, 0.0 }
  0xe0   : > { %456 = vst.msk [vmem:[%s768_s19 + $0x20] sm:$0xff] %vm451_vm1, %v437_v52  ;;  %v423_v55 = vpop.f32.mrf.mxu0  ;;  %v448_v56 = vadd.f32 %v671_v54, %v630_v43  ;;  %v487_v10 = vmul.f32 %v437_v52, %v437_v52  ;;  %v467_v14 = vsel %vm451_vm1, %v437_v52, 0.0  ;;  %v502_v28 = vsel %vm451_vm1, %v489_v18, 0.0 }
  0xe1   : > { %455 = vst.msk [vmem:[%s768_s19 + $0x18] sm:$0xff] %vm451_vm1, %v432_v53  ;;  %v424_v58 = vadd.f32 %v630_v43, %v423_v55  ;;  %v439_v59 = vpop.f32.mrf.mxu1  ;;  %v491_v3 = vsel %vm451_vm1, %v483_v57, 0.0  ;;  %v486_v4 = vmul.f32 %v432_v53, %v432_v53  ;;  %v465_v9 = vsel %vm451_vm1, %v432_v53, 0.0 }
  0xe2   : > { %459 = vst.msk [vmem:[%s768_s19 + $0x38] sm:$0xff] %vm451_vm1, %v448_v56  ;;  %v440_v60 = vadd.f32 %v630_v43, %v439_v59  ;;  %v498_v19 = vsel %vm451_vm1, %v487_v10, 0.0  ;;  %v490_v24 = vmul.f32 %v448_v56, %v448_v56  ;;  %v473_v29 = vsel %vm451_vm1, %v448_v56, 0.0 }
  0xe3   : > { %453 = vst.msk [vmem:[%s768_s19 + $0x8] sm:$0xff] %vm451_vm1, %v424_v58  ;;  %v461_v63 = vsel %vm451_vm1, %v424_v58, 0.0  ;;  %v484_v0 = vmul.f32 %v424_v58, %v424_v58  ;;  %v496_v13 = vsel %vm451_vm1, %v486_v4, 0.0 }
  0xe4   : > { %v462_v1 = vadd.f32 %v461_v63, %v460_v62  ;;  %457 = vst.msk [vmem:[%s768_s19 + $0x28] sm:$0xff] %vm451_vm1, %v440_v60  ;;  %v488_v15 = vmul.f32 %v440_v60, %v440_v60  ;;  %v469_v20 = vsel %vm451_vm1, %v440_v60, 0.0  ;;  %v504_v32 = vsel %vm451_vm1, %v490_v24, 0.0 }
  0xe5   : > { %v492_v5 = vsel %vm451_vm1, %v484_v0, 0.0 }
  0xe6   : > { %v464_v6 = vadd.f32 %v463_v2, %v462_v1  ;;  %v493_v7 = vadd.f32 %v492_v5, %v491_v3  ;;  %v500_v25 = vsel %vm451_vm1, %v488_v15, 0.0 }
  0xe8   : > { %v495_v11 = vadd.f32 %v494_v8, %v493_v7  ;;  %v466_v12 = vadd.f32 %v465_v9, %v464_v6 }
  0xea   : > { %v468_v16 = vadd.f32 %v467_v14, %v466_v12  ;;  %v497_v17 = vadd.f32 %v496_v13, %v495_v11 }
  0xec   : > { %v470_v21 = vadd.f32 %v469_v20, %v468_v16  ;;  %v499_v22 = vadd.f32 %v498_v19, %v497_v17 }
  0xee   : > { %v472_v26 = vadd.f32 %v471_v23, %v470_v21  ;;  %v501_v27 = vadd.f32 %v500_v25, %v499_v22 }
  0xf0   : > { %v474_v30 = vadd.f32 %v473_v29, %v472_v26  ;;  %v503_v31 = vadd.f32 %v502_v28, %v501_v27 }
  0xf2   : > { %v475_v33 = vrot.slane %v474_v30, 4  ;;  %v505_v34 = vadd.f32 %v504_v32, %v503_v31 }
  0xf4   : > { %v476_v35 = vadd.f32 %v475_v33, %v474_v30  ;;  %v506_v36 = vrot.slane %v505_v34, 4 }
  0xf6   : > { %v477_v37 = vrot.slane %v476_v35, 2  ;;  %v507_v38 = vadd.f32 %v506_v36, %v505_v34 }
  0xf8   : > { %v478_v39 = vadd.f32 %v477_v37, %v476_v35  ;;  %v508_v40 = vrot.slane %v507_v38, 2 }
  0xfa   : > { %v479_v41 = vrot.slane %v478_v39, 1  ;;  %v509_v42 = vadd.f32 %v508_v40, %v507_v38 }
  0xfc   : > { %v480_v43 = vadd.f32 %v479_v41, %v478_v39  ;;  %v510_v44 = vrot.slane %v509_v42, 1 }
  0xfe   : > { %482 = vst.msk [vmem:[%s295_s22] sm:$0x1] %vm481_vm2, %v480_v43  ;;  %v511_v45 = vadd.f32 %v510_v44, %v509_v42 }
 0x100   : > { %512 = vst.msk [vmem:[%s298_s27] sm:$0x1] %vm481_vm2, %v511_v45 }
 0x101 PF: > { %s18_s24 = sadd.s32 1, %s689_s24  }
 0x102   : > { %p15_p5 = scmp.ge.s32.totalorder %s18_s24, 4  }
 0x104   :  { %17 = sbr.rel (!%p15_p5) target bundleno = 1 (0x1), region = 94 }

// kernel: res_bottleneck_block.9
= control target key start
LH: loop header
LB: loop body
LE: loop exit
PB: predicated region body
PF: predicated region fallthrough
CT: control target
= control target key end

     0   :  { %s1085_s18 = smov 0   ;;  %s1215_s0 = inlined_call_operand.vmem [shape: bf16[2,18,8,48], index: 0, kind: input, shape index: {}]   ;;  %s1216_s1 = inlined_call_operand.vmem [shape: bf16[3,48,16], index: 1, kind: input, shape index: {}]   ;;  %s1217_s2 = inlined_call_operand.vmem [shape: f32[1,16], index: 2, kind: input, shape index: {}]   ;;  %s1218_s3 = inlined_call_operand.vmem [shape: bf16[128,16], index: 3, kind: output, shape index: {0}]   ;;  %s1219_s4 = inlined_call_operand.vmem [shape: f32[2,1,16], index: 4, kind: output, shape index: {1}]   ;;  %s1220_s5 = inlined_call_operand.vmem [shape: f32[2,1,16], index: 5, kind: output, shape index: {2}]  }
   0x1 LB: > { %s1091_s19 = sadd.s32 4294967295, %s1053_s18   ;;  %p864_p0 = scmp.ge.s32.totalorder %s1053_s18, 1  ;;  %s1053_s18 = sphi %s1085_s18, %s16_s18  }
   0x2   : > { %p192_p1 = scmp.lt.s32.totalorder %s1053_s18, 3 }
   0x4   : > { %p193_p2 = pnand %p864_p0, %p192_p1 }
   0x5   : > { %p226_p3 = scmp.lt.s32.totalorder (!%p193_p2), %s1091_s19, 1  ;;  %s866_s20 = sshll.u32 (!%p193_p2), %s1091_s19, 3 }
   0x6   : > { %196 = sbr.rel (%p193_p2) target bundleno = 273 (0x111), region = 32  ;;  %p232_p4 = scmp.lt.s32.totalorder (!%p193_p2), %s866_s20, 15 }
   0xb   : > { %v1026_v0 = vld [vmem:[%s1216_s1 + $0x28] sm:$0xff]   ;;  %v1027_v1 = vld [vmem:[%s1216_s1 + $0x10] sm:$0xff]   ;;  %v1028_v2 = vld [vmem:[%s1216_s1 + $0x20] sm:$0xff]   ;;  %s1106_s26 = scalar_select %p226_p3, %s1091_s19, 1  ;;  %vm312_vm0 = vcmask 392192   ;;  %vm691_vm1 = vcmask 125952  }
   0xc   : > { %969 = vmatprep.subr.bf16.mxu0 %v1026_v0  ;;  %983 = vmatprep.subr.bf16.mxu1 %v1027_v1  ;;  %v1029_v3 = vld [vmem:[%s1216_s1 + $0x8] sm:$0xff]   ;;  %v1030_v4 = vld [vmem:[%s1216_s1 + $0x18] sm:$0xff]   ;;  %v1031_v5 = vld [vmem:[%s1216_s1] sm:$0xff]   ;;  %s1222_s20 = smov (!%p232_p4, %s866_s20), 15  ;;  %vm700_vm2 = vcmask 130048   ;;  %vm722_vm3 = vcmask 122880  }
   0xd   : > { %970 = vmatpush3.bf16.msra.mxu0 %v1026_v0  ;;  %984 = vmatpush3.bf16.msra.mxu1 %v1027_v1  ;;  %s1017_s6 = smul.u32 72, %s1106_s26  ;;  %v1036_v6 = vld [vmem:[%s1216_s1 + $0x40] sm:$0xff]   ;;  %v1037_v11 = vld [vmem:[%s1216_s1 + $0x38] sm:$0xff]   ;;  %v1042_v14 = vld [vmem:[%s1216_s1 + $0x30] sm:$0xff]   ;;  %s867_s19 = sshll.u32 %s1222_s20, 2 }
   0xe   : > { %971 = vmatprep.subr.bf16.mxu0 %v1028_v2  ;;  %985 = vmatprep.subr.bf16.mxu1 %v1029_v3  ;;  %v929_v40 = vld [vmem:[%s1217_s2] ss:$0 sm:$0xff]  ;;  %s1163_s25 = scalar_lea.vmem %s1218_s3, %s867_s19  ;;  %s239_s29 = scalar_lea.vmem %s1219_s4, %s1106_s26 }
   0xf   : > { %s1121_s11 = scalar_lea.vmem %s1215_s0, %s1017_s6  ;;  %s242_s7 = scalar_lea.vmem %s1220_s5, %s1106_s26 }
  0x10   : > { %v1032_v7 = vld [vmem:[%s1121_s11 + $0x24] sm:$0xff]   ;;  %v1034_v9 = vld [vmem:[%s1121_s11 + $0x2c] sm:$0xff]   ;;  %v1038_v12 = vld [vmem:[%s1121_s11 + $0x34] sm:$0xff]  }
  0x11   : > { %972 = vmatpush3.bf16.msra.mxu0 %v1028_v2  ;;  %986 = vmatpush3.bf16.msra.mxu1 %v1029_v3  ;;  %v1033_v8 = vld [vmem:[%s1121_s11] sm:$0xff]   ;;  %v1035_v10 = vld [vmem:[%s1121_s11 + $0x8] sm:$0xff]   ;;  %v1039_v13 = vld [vmem:[%s1121_s11 + $0x10] sm:$0xff]  }
  0x12   : > { %973 = vmatprep.subr.bf16.mxu0 %v1030_v4  ;;  %987 = vmatprep.subr.bf16.mxu1 %v1031_v5  ;;  %v1040_v15 = vld [vmem:[%s1121_s11 + $0x3c] sm:$0xff]   ;;  %v1043_v17 = vld [vmem:[%s1121_s11 + $0x4] sm:$0xff]   ;;  %v1044_v18 = vld [vmem:[%s1121_s11 + $0x14] sm:$0xff]  }
  0x13   : > { %975 = vmatprep.mubr.msk.bf16.mxu0 %vm312_vm0, %v1032_v7  ;;  %989 = vmatprep.mubr.msk.bf16.mxu1 %vm312_vm0, %v1033_v8  ;;  %v1041_v16 = vld [vmem:[%s1121_s11 + $0x18] sm:$0xff]   ;;  %v1045_v19 = vld [vmem:[%s1121_s11 + $0xc] sm:$0xff]  }
  0x14   : > { %v1046_v20 = vld [vmem:[%s1121_s11 + $0x1c] sm:$0xff]  }
  0x15   : > { %974 = vmatpush3.bf16.msra.mxu0 %v1030_v4  ;;  %988 = vmatpush3.bf16.msra.mxu1 %v1031_v5 }
  0x16   : > { %997 = vmatprep.subr.bf16.mxu0 %v1036_v6  ;;  %1011 = vmatprep.subr.bf16.mxu1 %v1036_v6 }
  0x18   : > { %976 = vmatmul.mubr.msk.bf16.vlgmr.msra.gmra.mxu0 %vm312_vm0, %v1034_v9  ;;  %990 = vmatmul.mubr.msk.bf16.vlgmr.msra.gmra.mxu1 %vm312_vm0, %v1035_v10 }
  0x19   : > { %998 = vmatpush3.bf16.msra.mxu0 %v1036_v6  ;;  %1014 = vmatpush3.bf16.msra.mxu1 %v1036_v6 }
  0x1a   : > { %999 = vmatprep.subr.bf16.mxu0 %v1037_v11  ;;  %979 = vmatprep.mubr.msk.bf16.mxu0 %vm312_vm0, %v1038_v12 }
  0x1b   : > { %993 = vmatprep.mubr.msk.bf16.mxu1 %vm312_vm0, %v1039_v13  ;;  %1012 = vmatprep.subr.bf16.mxu1 %v1037_v11 }
  0x1d   : > { %1000 = vmatpush3.bf16.msra.mxu0 %v1037_v11  ;;  %1015 = vmatpush3.bf16.msra.mxu1 %v1037_v11 }
  0x1e   : > { %1001 = vmatprep.subr.bf16.mxu0 %v1042_v14  ;;  %1013 = vmatprep.subr.bf16.mxu1 %v1042_v14 }
  0x20   : > { %980 = vmatmul.mubr.msk.bf16.gmra.mxu0 %vm312_vm0, %v1040_v15  ;;  %994 = vmatmul.mubr.msk.bf16.gmra.mxu1 %vm312_vm0, %v1041_v16 }
  0x21   : > { %1002 = vmatpush3.bf16.msra.mxu0 %v1042_v14  ;;  %1016 = vmatpush3.bf16.msra.mxu1 %v1042_v14 }
  0x22   : > { %1003 = vmatprep.mubr.msk.bf16.mxu0 %vm312_vm0, %v1043_v17  ;;  %1007 = vmatprep.mubr.msk.bf16.mxu1 %vm312_vm0, %v1044_v18 }
  0x28   : > { %1004 = vmatmul.mubr.msk.bf16.vlgmr.msra.gmra.mxu0 %vm312_vm0, %v1045_v19  ;;  %1008 = vmatmul.mubr.msk.bf16.vlgmr.msra.gmra.mxu1 %vm312_vm0, %v1046_v20 }
  0xd8   : > { %v977_v21 = vpop.f32.mrf.mxu0  ;;  %v991_v22 = vpop.f32.mrf.mxu1 }
  0xd9   : > { %v483_v36 = vadd.f32 %v991_v22, %v977_v21 }
  0xda   : > { %v359_v23 = vpop.f32.mrf.mxu0  ;;  %v474_v24 = vpop.f32.mrf.mxu1 }
  0xdb   : > { %v475_v41 = vadd.f32 %v474_v24, %v359_v23 }
  0xdc   : > { %v978_v25 = vpop.f32.mrf.mxu0  ;;  %v992_v26 = vpop.f32.mrf.mxu1 }
  0xdd   : > { %v486_v59 = vadd.f32 %v992_v26, %v978_v25 }
  0xde   : > { %v362_v27 = vpop.f32.mrf.mxu0  ;;  %v477_v28 = vpop.f32.mrf.mxu1 }
  0xdf   : > { %v478_v60 = vadd.f32 %v477_v28, %v362_v27 }
  0xe0   : > { %v981_v29 = vpop.f32.mrf.mxu0  ;;  %v995_v30 = vpop.f32.mrf.mxu1 }
  0xe1   : > { %v499_v38 = vadd.f32 %v995_v30, %v981_v29 }
  0xe2   : > { %v375_v31 = vpop.f32.mrf.mxu0  ;;  %v490_v32 = vpop.f32.mrf.mxu1 }
  0xe3   : > { %v491_v44 = vadd.f32 %v490_v32, %v375_v31 }
  0xe4   : > { %v982_v33 = vpop.f32.mrf.mxu0  ;;  %v996_v34 = vpop.f32.mrf.mxu1 }
  0xe5   : > { %v502_v61 = vadd.f32 %v996_v34, %v982_v33 }
  0xe6   : > { %v378_v35 = vpop.f32.mrf.mxu0  ;;  %v493_v37 = vpop.f32.mrf.mxu1 }
  0xe7   : > { %v494_v0 = vadd.f32 %v493_v37, %v378_v35 }
  0xe8   : > { %v1005_v39 = vpop.f32.mrf.mxu0  ;;  %v1009_v43 = vpop.f32.mrf.mxu1 }
  0xe9   : > { %v638_v42 = vadd.f32 %v1005_v39, %v483_v36  ;;  %v642_v45 = vadd.f32 %v1009_v43, %v499_v38 }
  0xea   : > { %v605_v46 = vpop.f32.mrf.mxu0  ;;  %v621_v49 = vpop.f32.mrf.mxu1 }
  0xeb   : > { %v653_v47 = vadd.f32 %v929_v40, %v638_v42  ;;  %v636_v48 = vadd.f32 %v605_v46, %v475_v41  ;;  %v1165_v50 = vadd.f32 %v929_v40, %v642_v45  ;;  %v640_v51 = vadd.f32 %v621_v49, %v491_v44 }
  0xec   : > { %v1006_v52 = vpop.f32.mrf.mxu0  ;;  %v1010_v55 = vpop.f32.mrf.mxu1 }
  0xed   : > { %v942_v53 = vpack.c.bf16 %v653_v47, %v653_v47  ;;  %v651_v54 = vadd.f32 %v929_v40, %v636_v48  ;;  %v946_v56 = vpack.c.bf16 %v1165_v50, %v1165_v50  ;;  %v655_v57 = vadd.f32 %v929_v40, %v640_v51 }
  0xee   : > { %v608_v58 = vpop.f32.mrf.mxu0  ;;  %v624_v63 = vpop.f32.mrf.mxu1  ;;  %v639_v2 = vadd.f32 %v1006_v52, %v486_v59  ;;  %v643_v3 = vadd.f32 %v1010_v55, %v502_v61  ;;  %v726_v16 = vmul.f32 %v653_v47, %v653_v47  ;;  %v704_v20 = vsel %vm700_vm2, %v653_v47, 0.0 }
  0xef   : > { %694 = vst.msk [vmem:[%s1163_s25 + $0x8] sm:$0xf] %vm691_vm1, %v942_v53  ;;  %v940_v62 = vpack.c.bf16 %v651_v54, %v651_v54  ;;  %698 = vst.msk [vmem:[%s1163_s25 + $0x18] sm:$0xf] %vm691_vm1, %v946_v56  ;;  %v944_v1 = vpack.c.bf16 %v655_v57, %v655_v57  ;;  %v637_v4 = vadd.f32 %v608_v58, %v478_v60  ;;  %v701_v13 = vsel %vm700_vm2, %v651_v54, 0.0 }
  0xf0   : > { %v641_v5 = vadd.f32 %v624_v63, %v494_v0  ;;  %v654_v6 = vadd.f32 %v929_v40, %v639_v2  ;;  %v658_v7 = vadd.f32 %v929_v40, %v643_v3  ;;  %v724_v10 = vmul.f32 %v651_v54, %v651_v54 }
  0xf1   : > { %692 = vst.msk [vmem:[%s1163_s25] sm:$0xf] %vm691_vm1, %v940_v62  ;;  %696 = vst.msk [vmem:[%s1163_s25 + $0x10] sm:$0xf] %vm691_vm1, %v944_v1  ;;  %v652_v8 = vadd.f32 %v929_v40, %v637_v4  ;;  %v735_v27 = vsel %vm700_vm2, %v726_v16, 0.0  ;;  %v728_v28 = vmul.f32 %v655_v57, %v655_v57  ;;  %v708_v30 = vsel %vm700_vm2, %v655_v57, 0.0 }
  0xf2   : > { %v656_v9 = vadd.f32 %v929_v40, %v641_v5  ;;  %v943_v11 = vpack.c.bf16 %v654_v6, %v654_v6  ;;  %v947_v12 = vpack.c.bf16 %v658_v7, %v658_v7  ;;  %v732_v21 = vsel %vm700_vm2, %v724_v10, 0.0 }
  0xf3   : > { %v941_v14 = vpack.c.bf16 %v652_v8, %v652_v8  ;;  %v702_v15 = vsel %vm700_vm2, %v652_v8, 0.0  ;;  %v725_v18 = vmul.f32 %v652_v8, %v652_v8  ;;  %v727_v22 = vmul.f32 %v654_v6, %v654_v6 }
  0xf4   : > { %695 = vst.msk [vmem:[%s1163_s25 + $0xc] sm:$0xf] %vm691_vm1, %v943_v11  ;;  %699 = vst.msk [vmem:[%s1163_s25 + $0x1c] sm:$0xf] %vm691_vm1, %v947_v12  ;;  %v703_v17 = vadd.f32 %v702_v15, %v701_v13  ;;  %v945_v19 = vpack.c.bf16 %v656_v9, %v656_v9  ;;  %v706_v25 = vsel %vm700_vm2, %v654_v6, 0.0  ;;  %v729_v34 = vmul.f32 %v656_v9, %v656_v9 }
  0xf5   : > { %693 = vst.msk [vmem:[%s1163_s25 + $0x4] sm:$0xf] %vm691_vm1, %v941_v14  ;;  %v733_v24 = vsel %vm700_vm2, %v725_v18, 0.0  ;;  %v737_v32 = vsel %vm700_vm2, %v727_v22, 0.0  ;;  %v710_v35 = vsel %vm700_vm2, %v656_v9, 0.0  ;;  %v730_v37 = vmul.f32 %v1165_v50, %v1165_v50 }
  0xf6   : > { %v705_v23 = vadd.f32 %v704_v20, %v703_v17  ;;  %697 = vst.msk [vmem:[%s1163_s25 + $0x14] sm:$0xf] %vm691_vm1, %v945_v19  ;;  %v734_v26 = vadd.f32 %v733_v24, %v732_v21  ;;  %v739_v38 = vsel %vm700_vm2, %v728_v28, 0.0  ;;  %v712_v40 = vsel %vm700_vm2, %v1165_v50, 0.0 }
  0xf7   : > { %v731_v42 = vmul.f32 %v658_v7, %v658_v7  ;;  %v741_v44 = vsel %vm700_vm2, %v729_v34, 0.0  ;;  %v714_v45 = vsel %vm700_vm2, %v658_v7, 0.0  ;;  %v743_v47 = vsel %vm700_vm2, %v730_v37, 0.0 }
  0xf8   : > { %v707_v29 = vadd.f32 %v706_v25, %v705_v23  ;;  %v736_v31 = vadd.f32 %v735_v27, %v734_v26 }
  0xf9   : > { %v745_v51 = vsel %vm700_vm2, %v731_v42, 0.0 }
  0xfa   : > { %v709_v33 = vadd.f32 %v708_v30, %v707_v29  ;;  %v738_v36 = vadd.f32 %v737_v32, %v736_v31 }
  0xfc   : > { %v711_v39 = vadd.f32 %v710_v35, %v709_v33  ;;  %v740_v41 = vadd.f32 %v739_v38, %v738_v36 }
  0xfe   : > { %v713_v43 = vadd.f32 %v712_v40, %v711_v39  ;;  %v742_v46 = vadd.f32 %v741_v44, %v740_v41 }
 0x100   : > { %v715_v48 = vadd.f32 %v714_v45, %v713_v43  ;;  %v744_v49 = vadd.f32 %v743_v47, %v742_v46 }
 0x102   : > { %v716_v52 = vrot.slane %v715_v48, 4  ;;  %v746_v53 = vadd.f32 %v745_v51, %v744_v49 }
 0x104   : > { %v717_v54 = vadd.f32 %v716_v52, %v715_v48  ;;  %v747_v50 = vrot.slane %v746_v53, 4 }
 0x106   : > { %v718_v55 = vrot.slane %v717_v54, 2  ;;  %v748_v56 = vadd.f32 %v747_v50, %v746_v53 }
 0x108   : > { %v719_v57 = vadd.f32 %v718_v55, %v717_v54  ;;  %v749_v58 = vrot.slane %v748_v56, 2 }
 0x10a   : > { %v720_v59 = vrot.slane %v719_v57, 1  ;;  %v750_v60 = vadd.f32 %v749_v58, %v748_v56 }
 0x10c   : > { %v721_v61 = vadd.f32 %v720_v59, %v719_v57  ;;  %v751_v62 = vrot.slane %v750_v60, 1 }
 0x10e   : > { %723 = vst.msk [vmem:[%s239_s29] sm:$0x1] %vm722_vm3, %v721_v61  ;;  %v752_v63 = vadd.f32 %v751_v62, %v750_v60 }
 0x110   : > { %753 = vst.msk [vmem:[%s242_s7] sm:$0x1] %vm722_vm3, %v752_v63 }
 0x111 PF: > { %s16_s18 = sadd.s32 1, %s1053_s18  }
 0x112   : > { %p13_p5 = scmp.ge.s32.totalorder %s16_s18, 4  }
 0x114   :  { %15 = sbr.rel (!%p13_p5) target bundleno = 1 (0x1), region = 90 }

</bundles_post_ra>
